<compile_context>
chip_gen: v7x
topology: tpu7x:2x2x1
jax: 0.10.0
libtpu: 0.0.40
codegen_flags: <defaults>
</compile_context>

<pallas_src>
import functools

import numpy as np
import jax
import jax.numpy as jnp
from jax.experimental import pallas as pl
from jax.experimental.pallas import tpu as pltpu


POOL_OUT = 4  # AdaptiveAvgPool2d(4)


def _round_up(a, m):
    return (a + m - 1) // m * m


def _cdiv(a, b):
    return -(-a // b)


def build_adaptive_pool_matrix(H, W, out=POOL_OUT):
    """(H*W, out*out) float64 matrix P s.t. x_flat @ P == AdaptiveAvgPool2d(out)(x) flat."""
    P = np.zeros((H * W, out * out), dtype=np.float64)
    for i in range(out):
        h0 = (i * H) // out
        h1 = -((-(i + 1) * H) // out)      # ceil((i+1)*H/out)
        for j in range(out):
            w0 = (j * W) // out
            w1 = -((-(j + 1) * W) // out)  # ceil((j+1)*W/out)
            area = float((h1 - h0) * (w1 - w0))
            for h in range(h0, h1):
                for w in range(w0, w1):
                    P[h * W + w, i * out + j] = 1.0 / area
    return P


def _matmul_bias_kernel(x_ref, w_ref, b_ref, o_ref, acc_ref, *, tk, w_resident):
    """One (tm, tn) output tile of x @ W_fold + b; grid axis 2 is the K reduction.

    If w_resident, w_ref holds the FULL (K_pad, tn) weight in VMEM and is sliced
    per K step; otherwise w_ref is the streamed (tk, tn) block for this K step.
    """
    k = pl.program_id(2)

    @pl.when(k == 0)
    def _init():
        # Fold the bias into the accumulator init (no extra VPU pass at finalize).
        acc_ref[...] = jnp.broadcast_to(b_ref[...], acc_ref.shape)

    if w_resident:
        off = pl.multiple_of(k * tk, tk)
        w_blk = w_ref[pl.ds(off, tk), :]
    else:
        w_blk = w_ref[...]

    acc_ref[...] += jnp.dot(x_ref[...], w_blk, preferred_element_type=jnp.float32)

    @pl.when(k == pl.num_programs(2) - 1)
    def _finalize():
        o_ref[...] = acc_ref[...].astype(o_ref.dtype)


def make_reglog_forward(lin_w, lin_b, C, H, W, *, compute_dtype=jnp.bfloat16):
    """Fold AdaptiveAvgPool2d(4) into the linear weight once and return a jitted
    forward(x) for NCHW input x of shape (N, C, H, W)."""
    lin_w = np.asarray(lin_w, dtype=np.float64)
    lin_b = np.asarray(lin_b, dtype=np.float64)
    L, S = lin_w.shape
    assert S == C * POOL_OUT * POOL_OUT

    # ---- one-time parameter prep (hoisted out of the per-call forward) ----
    P = build_adaptive_pool_matrix(H, W)                                  # (H*W, 16)
    w3 = lin_w.reshape(L, C, POOL_OUT * POOL_OUT).transpose(1, 2, 0)      # (C, 16, L)
    w_fold = np.einsum("pk,ckl->cpl", P, w3).reshape(C * H * W, L)        # (K, L)

    K = C * H * W
    K_pad = _round_up(K, 128)
    L_pad = _round_up(L, 128)      # lane-dense output (single 128-wide tile for L=10)
    tn = 128

    # bf16 inputs (halves HBM traffic on a mem-bound kernel); f32 bias + f32 acc.
    w_fold_pad = jnp.asarray(
        np.pad(w_fold, ((0, K_pad - K), (0, L_pad - L))), dtype=compute_dtype)
    b_pad = jnp.asarray(
        np.pad(lin_b, (0, L_pad - L)).reshape(1, L_pad), dtype=jnp.float32)

    itemsize = jnp.dtype(compute_dtype).itemsize
    # Keep W_fold fully resident in VMEM when its double-buffered footprint is
    # small (at RegLog shapes, K_pad*128*2B ~ 2 MB); otherwise stream (tk, tn).
    w_resident = (2 * K_pad * tn * itemsize) <= (12 << 20)

    # K tile for streaming x (and the in-kernel weight slice).
    tk = next(t for t in (4096, 2048, 1024, 512, 256, 128) if K_pad % t == 0)

    @jax.jit
    def forward(x):
        N = x.shape[0]
        # Row tile: multiple of 16 sublanes (bf16 packing), capped at 256, and
        # sized so medium/large N give >=2 row tiles (keeps v7x's second
        # TensorCore busy since the label axis has only one tile).
        tm = min(256, max(16, _round_up(_cdiv(N, 2), 16)))
        N_pad = _round_up(N, tm)

        # PyTorch flatten order (c, h, w) contiguous -> matches W_fold rows.
        x2d = x.reshape(N, K).astype(compute_dtype)
        if N_pad != N or K_pad != K:
            # Zero K padding is required for correctness (matches zero weight rows);
            # skipped entirely when shapes are already aligned.
            x2d = jnp.pad(x2d, ((0, N_pad - N), (0, K_pad - K)))

        if w_resident:
            w_spec = pl.BlockSpec((K_pad, tn), lambda i, j, k: (0, j))   # resident
        else:
            w_spec = pl.BlockSpec((tk, tn), lambda i, j, k: (k, j))      # streamed

        grid = (N_pad // tm, L_pad // tn, K_pad // tk)
        kernel = functools.partial(_matmul_bias_kernel, tk=tk, w_resident=w_resident)

        out = pl.pallas_call(
            kernel,
            out_shape=jax.ShapeDtypeStruct((N_pad, L_pad), jnp.float32),
            grid_spec=pltpu.PrefetchScalarGridSpec(
                num_scalar_prefetch=0,
                grid=grid,
                in_specs=[
                    pl.BlockSpec((tm, tk), lambda i, j, k: (i, k)),   # x rows (streamed)
                    w_spec,                                           # folded weight
                    pl.BlockSpec((1, tn), lambda i, j, k: (0, j)),    # bias
                ],
                out_specs=pl.BlockSpec((tm, tn), lambda i, j, k: (i, j)),
                scratch_shapes=[pltpu.VMEM((tm, tn), jnp.float32)],
            ),
            compiler_params=pltpu.CompilerParams(
                dimension_semantics=("parallel", "parallel", "arbitrary")),
        )(x2d, w_fold_pad, b_pad)
        return out[:N, :L]

    return forward


if __name__ == "__main__":
    # Small synthetic shapes consistent with the module (linear in-features = C*16).
    N, C, H, W = 20, 32, 16, 16
    L = 10                          # num_labels
    S = C * POOL_OUT * POOL_OUT     # 512

    key = jax.random.PRNGKey(0)
    kx, kw, kb = jax.random.split(key, 3)
    x = jax.random.normal(kx, (N, C, H, W), dtype=jnp.float32)

    # Deterministic parameter init (PyTorch-Linear-style uniform bounds).
    bound = 1.0 / np.sqrt(S)
    lin_w = jax.random.uniform(kw, (L, S), jnp.float32, -bound, bound)
    lin_b = jax.random.uniform(kb, (L,), jnp.float32, -bound, bound)

    forward = make_reglog_forward(lin_w, lin_b, C, H, W)
    out = jax.block_until_ready(forward(x))
    assert out.shape == (N, L)

    # Float64 reference of the original module: pool -> flatten -> linear.
    # (H, W divisible by 4 -> adaptive pool == uniform 4x4 average pooling.)
    x64 = np.asarray(x, dtype=np.float64)
    pooled_ref = x64.reshape(N, C, POOL_OUT, H // POOL_OUT, POOL_OUT, W // POOL_OUT).mean(axis=(3, 5))
    ref = (pooled_ref.reshape(N, S) @ np.asarray(lin_w, np.float64).T
           + np.asarray(lin_b, np.float64))
    # bf16 inputs with f32 accumulation: ~2-3 significant digits vs the f32 module
    # (flagged in review as acceptable for a linear-probe eval).
    np.testing.assert_allclose(np.asarray(out), ref, rtol=3e-2, atol=5e-3)

    print("KERNEL_OK")
</pallas_src>

<mosaic_0001>
module attributes {stable_mosaic.version = 11 : i64} {
  func.func @_matmul_bias_kernel(%arg0: i32, %arg1: i32, %arg2: i32, %arg3: memref<16x4096xbf16, #tpu.memory_space<vmem>>, %arg4: memref<8192x128xbf16, #tpu.memory_space<vmem>>, %arg5: memref<1x128xf32, #tpu.memory_space<vmem>>, %arg6: memref<16x128xf32, #tpu.memory_space<vmem>>, %arg7: memref<16x128xf32, #tpu.memory_space<vmem>>) attributes {dimension_semantics = [#tpu.dimension_semantics<parallel>, #tpu.dimension_semantics<parallel>, #tpu.dimension_semantics<arbitrary>], iteration_bounds = array<i64: 2, 1, 2>, scalar_prefetch = 0 : i64, scratch_operands = 1 : i64, tpu.core_type = #tpu.core_type<tc>, window_params = [{transform_indices = @transform_0, window_bounds = array<i64: 16, 4096>}, {transform_indices = @transform_1, window_bounds = array<i64: 8192, 128>}, {transform_indices = @transform_2, window_bounds = array<i64: 1, 128>}, {transform_indices = @transform_3, window_bounds = array<i64: 16, 128>}]} {
    %c0_i32 = arith.constant 0 : i32
    %0 = arith.cmpi eq, %arg2, %c0_i32 : i32
    %1 = arith.extui %0 : i1 to i32
    %c0_i32_0 = arith.constant 0 : i32
    %2 = arith.cmpi ne, %1, %c0_i32_0 : i32
    scf.if %2 {
      %c0_8 = arith.constant 0 : index
      %c0_9 = arith.constant 0 : index
      %15 = vector.load %arg5[%c0_8, %c0_9] : memref<1x128xf32, #tpu.memory_space<vmem>>, vector<1x128xf32>
      %16 = vector.shape_cast %15 : vector<1x128xf32> to vector<1x128xf32>
      %17 = vector.broadcast %16 : vector<1x128xf32> to vector<16x128xf32>
      %c0_10 = arith.constant 0 : index
      %c0_11 = arith.constant 0 : index
      %18 = vector.load %arg7[%c0_10, %c0_11] : memref<16x128xf32, #tpu.memory_space<vmem>>, vector<16x128xf32>
      tpu.vector_store %arg7[%c0_10, %c0_11], %17 {strides = array<i32>} : memref<16x128xf32, #tpu.memory_space<vmem>>, vector<16x128xf32>,
    } else {
    }
    %c4096_i32 = arith.constant 4096 : i32
    %3 = arith.muli %arg2, %c4096_i32 : i32
    %4 = tpu.assume_multiple %3, 4096 : i32
    %5 = arith.index_cast %4 : i32 to index
    %c0 = arith.constant 0 : index
    %6 = vector.load %arg4[%5, %c0] : memref<8192x128xbf16, #tpu.memory_space<vmem>>, vector<4096x128xbf16>
    %c0_1 = arith.constant 0 : index
    %c0_2 = arith.constant 0 : index
    %7 = vector.load %arg7[%c0_1, %c0_2] : memref<16x128xf32, #tpu.memory_space<vmem>>, vector<16x128xf32>
    %c0_3 = arith.constant 0 : index
    %c0_4 = arith.constant 0 : index
    %8 = vector.load %arg3[%c0_3, %c0_4] : memref<16x4096xbf16, #tpu.memory_space<vmem>>, vector<16x4096xbf16>
    %cst = arith.constant dense<0.000000e+00> : vector<16x128xf32>
    %9 = tpu.matmul %8, %6, %cst {dimension_numbers = #tpu.dot_dimension_numbers<[1], [0], [0], [1], [0, 0, 1, 1], [], []>} : vector<16x4096xbf16>, vector<4096x128xbf16>, vector<16x128xf32> -> vector<16x128xf32>
    %10 = arith.addf %7, %9 : vector<16x128xf32>
    %c0_5 = arith.constant 0 : index
    %c0_6 = arith.constant 0 : index
    %11 = vector.load %arg7[%c0_5, %c0_6] : memref<16x128xf32, #tpu.memory_space<vmem>>, vector<16x128xf32>
    tpu.vector_store %arg7[%c0_5, %c0_6], %10 {strides = array<i32>} : memref<16x128xf32, #tpu.memory_space<vmem>>, vector<16x128xf32>,
    %c1_i32 = arith.constant 1 : i32
    %12 = arith.cmpi eq, %arg2, %c1_i32 : i32
    %13 = arith.extui %12 : i1 to i32
    %c0_i32_7 = arith.constant 0 : i32
    %14 = arith.cmpi ne, %13, %c0_i32_7 : i32
    scf.if %14 {
      %c0_8 = arith.constant 0 : index
      %c0_9 = arith.constant 0 : index
      %15 = vector.load %arg7[%c0_8, %c0_9] : memref<16x128xf32, #tpu.memory_space<vmem>>, vector<16x128xf32>
      %c0_10 = arith.constant 0 : index
      %c0_11 = arith.constant 0 : index
      %16 = vector.load %arg6[%c0_10, %c0_11] : memref<16x128xf32, #tpu.memory_space<vmem>>, vector<16x128xf32>
      tpu.vector_store %arg6[%c0_10, %c0_11], %15 {strides = array<i32>} : memref<16x128xf32, #tpu.memory_space<vmem>>, vector<16x128xf32>,
    } else {
    }
    return
  }
  func.func @transform_0(%arg0: i32, %arg1: i32, %arg2: i32) -> (i32, i32) {
    %c0_i32 = arith.constant 0 : i32
    return %arg0, %arg2 : i32, i32
  }
  func.func @transform_1(%arg0: i32, %arg1: i32, %arg2: i32) -> (i32, i32) {
    %c0_i32 = arith.constant 0 : i32
    %c0_i32_0 = arith.constant 0 : i32
    return %c0_i32, %arg1 : i32, i32
  }
  func.func @transform_2(%arg0: i32, %arg1: i32, %arg2: i32) -> (i32, i32) {
    %c0_i32 = arith.constant 0 : i32
    %c0_i32_0 = arith.constant 0 : i32
    return %c0_i32, %arg1 : i32, i32
  }
  func.func @transform_3(%arg0: i32, %arg1: i32, %arg2: i32) -> (i32, i32) {
    %c0_i32 = arith.constant 0 : i32
    return %arg0, %arg1 : i32, i32
  }
}

</mosaic_0001>

<bundles_post_ra>
// kernel: forward.1
= control target key start
LH: loop header
LB: loop body
LE: loop exit
PB: predicated region body
PF: predicated region fallthrough
CT: control target
= control target key end

     0   :  { %s4418_s12 = smov 0   ;;  %s4420_s13 = smov 0   ;;  %s4927_s0 = inlined_call_operand.vmem [shape: bf16[32,8192], index: 0, kind: input, shape index: {}]   ;;  %s4928_s1 = inlined_call_operand.vmem [shape: bf16[8192,128], index: 1, kind: input, shape index: {}]   ;;  %s4929_s2 = inlined_call_operand.vmem [shape: f32[1,128], index: 2, kind: input, shape index: {}]   ;;  %s4930_s3 = inlined_call_operand.vmem [shape: f32[32,128], index: 3, kind: output, shape index: {}]  }
   0x1   :  { %s4422_s14 = smov 0   ;;  %s4424_s15 = smov 0  }
   0x2   :  { %s4426_s16 = smov 0   ;;  %s4428_s17 = smov 0  }
   0x3   :  { %s4430_s18 = smov 0  }
   0x4 LB: > { %s25_s19 = sadd.s32 1, %s4388_s16  ;;  %s32_s20 = sadd.s32 1, %s4392_s17  ;;  %s4396_s18 = sphi %s4430_s18, %s13_s18   ;;  %s4392_s17 = sphi %s4428_s17, %s4936_s17   ;;  %s4388_s16 = sphi %s4426_s16, %s4935_s16   ;;  %s4384_s15 = sphi %s4424_s15, %s4934_s15   ;;  %s4380_s14 = sphi %s4422_s14, %s4933_s14   ;;  %s4376_s13 = sphi %s4420_s13, %s4932_s13   ;;  %s4372_s12 = sphi %s4418_s12, %s4931_s12  }
   0x5   : > { %p26_p0 = scmp.ge.s32.totalorder %s25_s19, 2  ;;  %p48_p1 = scmp.ne.s32.totalorder %s4376_s13, %s4372_s12 }
   0x6   : > { %p49_p2 = scmp.eq.s32.totalorder %s4396_s18, 0  ;;  %s41_s24 = sadd.s32 1, %s4376_s13 }
   0x7   : > { %s4938_s19 = smov (%p26_p0, %s25_s19), 0  ;;  %s4940_s20 = smov (!%p26_p0, %s32_s20), %s4392_s17 }
   0x8   : > { %p50_p3 = por %p49_p2, %p48_p1  ;;  %p34_p4 = scmp.ge.s32.totalorder %s4940_s20, 2 }
   0x9   : > { %s37_s21 = ssub.s32 %s4388_s16, %s4938_s19  ;;  %p3372_p6 = scmp.ge.s32.totalorder %s4396_s18, 4 }
   0xa   : > { %s4942_s20 = smov (%p34_p4, %s4940_s20), 0 }
   0xb   : > { %s36_s22 = ssub.s32 %s4392_s17, %s4942_s20  ;;  %167 = sbr.rel (%p3372_p6) target bundleno = 41 (0x29), region = 24 }
   0xc   : > { %s38_s23 = sor.u32 %s37_s21, %s36_s22 }
   0xd   : > { %p39_p5 = scmp.eq.s32.totalorder %s38_s23, 0 }
   0xf   : > { %s4469_s25 = scalar_select %p39_p5, %s4376_s13, %s41_s24  }
  0x12   : > { %170 = sbr.rel (!%p50_p3) target bundleno = 41 (0x29), region = 28  ;;  %s172_s26 = sand.u32 (%p50_p3), 1, %s4376_s13  }
  0x13   : > { %s3375_s27 = sshll.u32 (%p50_p3), %s4388_s16, 5  ;;  %s3373_s28 = sshll.u32 (%p50_p3), %s172_s26, 8 }
  0x14   : > { %s3677_s29 = sshll.u32 (%p50_p3), %s4392_s17, 7  ;;  %s4483_s8 = scalar_lea.vmem (%p50_p3), [#allocation3], %s3373_s28 }
  0x15   : > { %s178_s30 = sadd.s32 (%p50_p3), %s3677_s29, %s3375_s27 }
  0x16   : > { %s3377_s4 = sshll.u32 (%p50_p3), %s178_s30, 2 }
  0x17   : > { %s4478_s7 = scalar_lea.vmem (%p50_p3), %s4927_s0, %s3377_s4 }
  0x18   : > { %v193_v0 = vld [vmem:[%s4478_s7] sm:$0xff] (%p50_p3)  ;;  %v195_v1 = vld [vmem:[%s4478_s7 + $0x8] sm:$0xff] (%p50_p3)  ;;  %v197_v2 = vld [vmem:[%s4478_s7 + $0x10] sm:$0xff] (%p50_p3) }
  0x19   : > { %194 = vst [vmem:[%s4483_s8] sm:$0xff] %v193_v0  ;;  %196 = vst [vmem:[%s4483_s8 + $0x8] sm:$0xff] %v195_v1  ;;  %v199_v3 = vld [vmem:[%s4478_s7 + $0x18] sm:$0xff]  ;;  %v201_v4 = vld [vmem:[%s4478_s7 + $0x20] sm:$0xff] }
  0x1a   : > { %198 = vst [vmem:[%s4483_s8 + $0x10] sm:$0xff] %v197_v2  ;;  %v203_v5 = vld [vmem:[%s4478_s7 + $0x28] sm:$0xff]  ;;  %200 = vst [vmem:[%s4483_s8 + $0x18] sm:$0xff] %v199_v3  ;;  %v205_v6 = vld [vmem:[%s4478_s7 + $0x30] sm:$0xff] }
  0x1b   : > { %202 = vst [vmem:[%s4483_s8 + $0x20] sm:$0xff] %v201_v4  ;;  %204 = vst [vmem:[%s4483_s8 + $0x28] sm:$0xff] %v203_v5  ;;  %v207_v7 = vld [vmem:[%s4478_s7 + $0x38] sm:$0xff]  ;;  %v209_v8 = vld [vmem:[%s4478_s7 + $0x40] sm:$0xff] }
  0x1c   : > { %206 = vst [vmem:[%s4483_s8 + $0x30] sm:$0xff] %v205_v6  ;;  %208 = vst [vmem:[%s4483_s8 + $0x38] sm:$0xff] %v207_v7  ;;  %v211_v9 = vld [vmem:[%s4478_s7 + $0x48] sm:$0xff]  ;;  %v213_v10 = vld [vmem:[%s4478_s7 + $0x50] sm:$0xff] }
  0x1d   : > { %210 = vst [vmem:[%s4483_s8 + $0x40] sm:$0xff] %v209_v8  ;;  %v215_v11 = vld [vmem:[%s4478_s7 + $0x58] sm:$0xff]  ;;  %212 = vst [vmem:[%s4483_s8 + $0x48] sm:$0xff] %v211_v9  ;;  %v217_v12 = vld [vmem:[%s4478_s7 + $0x60] sm:$0xff] }
  0x1e   : > { %214 = vst [vmem:[%s4483_s8 + $0x50] sm:$0xff] %v213_v10  ;;  %216 = vst [vmem:[%s4483_s8 + $0x58] sm:$0xff] %v215_v11  ;;  %v219_v13 = vld [vmem:[%s4478_s7 + $0x68] sm:$0xff]  ;;  %v221_v14 = vld [vmem:[%s4478_s7 + $0x70] sm:$0xff] }
  0x1f   : > { %218 = vst [vmem:[%s4483_s8 + $0x60] sm:$0xff] %v217_v12  ;;  %220 = vst [vmem:[%s4483_s8 + $0x68] sm:$0xff] %v219_v13  ;;  %v223_v15 = vld [vmem:[%s4478_s7 + $0x78] sm:$0xff]  ;;  %v225_v16 = vld [vmem:[%s4478_s7 + $0x100] sm:$0xff] }
  0x20   : > { %222 = vst [vmem:[%s4483_s8 + $0x70] sm:$0xff] %v221_v14  ;;  %v227_v17 = vld [vmem:[%s4478_s7 + $0x108] sm:$0xff]  ;;  %224 = vst [vmem:[%s4483_s8 + $0x78] sm:$0xff] %v223_v15  ;;  %v229_v18 = vld [vmem:[%s4478_s7 + $0x110] sm:$0xff] }
  0x21   : > { %226 = vst [vmem:[%s4483_s8 + $0x80] sm:$0xff] %v225_v16  ;;  %228 = vst [vmem:[%s4483_s8 + $0x88] sm:$0xff] %v227_v17  ;;  %v231_v19 = vld [vmem:[%s4478_s7 + $0x118] sm:$0xff]  ;;  %v233_v20 = vld [vmem:[%s4478_s7 + $0x120] sm:$0xff] }
  0x22   : > { %230 = vst [vmem:[%s4483_s8 + $0x90] sm:$0xff] %v229_v18  ;;  %232 = vst [vmem:[%s4483_s8 + $0x98] sm:$0xff] %v231_v19  ;;  %v235_v21 = vld [vmem:[%s4478_s7 + $0x128] sm:$0xff]  ;;  %v237_v22 = vld [vmem:[%s4478_s7 + $0x130] sm:$0xff] }
  0x23   : > { %234 = vst [vmem:[%s4483_s8 + $0xa0] sm:$0xff] %v233_v20  ;;  %v239_v23 = vld [vmem:[%s4478_s7 + $0x138] sm:$0xff]  ;;  %236 = vst [vmem:[%s4483_s8 + $0xa8] sm:$0xff] %v235_v21  ;;  %v241_v24 = vld [vmem:[%s4478_s7 + $0x140] sm:$0xff] }
  0x24   : > { %238 = vst [vmem:[%s4483_s8 + $0xb0] sm:$0xff] %v237_v22  ;;  %240 = vst [vmem:[%s4483_s8 + $0xb8] sm:$0xff] %v239_v23  ;;  %v243_v25 = vld [vmem:[%s4478_s7 + $0x148] sm:$0xff]  ;;  %v245_v26 = vld [vmem:[%s4478_s7 + $0x150] sm:$0xff] }
  0x25   : > { %242 = vst [vmem:[%s4483_s8 + $0xc0] sm:$0xff] %v241_v24  ;;  %244 = vst [vmem:[%s4483_s8 + $0xc8] sm:$0xff] %v243_v25  ;;  %v247_v27 = vld [vmem:[%s4478_s7 + $0x158] sm:$0xff]  ;;  %v249_v28 = vld [vmem:[%s4478_s7 + $0x160] sm:$0xff] }
  0x26   : > { %246 = vst [vmem:[%s4483_s8 + $0xd0] sm:$0xff] %v245_v26  ;;  %v251_v29 = vld [vmem:[%s4478_s7 + $0x168] sm:$0xff]  ;;  %248 = vst [vmem:[%s4483_s8 + $0xd8] sm:$0xff] %v247_v27  ;;  %v253_v30 = vld [vmem:[%s4478_s7 + $0x170] sm:$0xff] }
  0x27   : > { %250 = vst [vmem:[%s4483_s8 + $0xe0] sm:$0xff] %v249_v28  ;;  %252 = vst [vmem:[%s4483_s8 + $0xe8] sm:$0xff] %v251_v29  ;;  %v255_v31 = vld [vmem:[%s4478_s7 + $0x178] sm:$0xff] }
  0x28   : > { %254 = vst [vmem:[%s4483_s8 + $0xf0] sm:$0xff] %v253_v30  ;;  %256 = vst [vmem:[%s4483_s8 + $0xf8] sm:$0xff] %v255_v31 }
  0x29 PF: > { %p3378_p7 = scmp.ge.s32.totalorder %s4396_s18, 1  ;;  %p261_p8 = scmp.lt.s32.totalorder %s4396_s18, 5 }
  0x2b   : > { %p262_p9 = pnand %p3378_p7, %p261_p8 }
  0x2c   : > { %s268_s9 = sand.u32 (!%p262_p9), 1, %s4372_s12   ;;  %s3380_s10 = sshll.u32 (!%p262_p9), %s4384_s15, 1 }
  0x2d   : > { %265 = sbr.rel (%p262_p9) target bundleno = 553 (0x229), region = 51  ;;  %s3379_s11 = sshll.u32 (!%p262_p9), %s268_s9, 8 }
  0x2e   : > { %p311_p10 = scmp.lt.s32.totalorder (!%p262_p9), %s3380_s10, 3  ;;  %s4555_s26 = scalar_lea.vmem (!%p262_p9), [#allocation3], %s3379_s11 }
  0x2f   : > { %p3382_p11 = scmp.ne.s32.totalorder (!%p262_p9), %s4380_s14, 0 }
  0x34   : > { %s4944_s10 = smov (!%p311_p10, %s3380_s10), 3  ;;  %323 = sbr.rel (%p3382_p11) target bundleno = 59 (0x3b), region = 59 }
  0x35   : > { %s3381_s21 = sshll.u32 %s4944_s10, 3  ;;  %v3383_v32 = vld [vmem:[%s4929_s2] ss:$0 sm:$0xff] (!%p3382_p11) }
  0x36   : > { %s4553_s24 = scalar_lea.vmem %s4930_s3, %s3381_s21  ;;  %331 = vst [vmem:[#allocation2] sm:$0xff] (!%p3382_p11), %v3383_v32  ;;  %332 = vst [vmem:[#allocation2 + $0x8] sm:$0xff] (!%p3382_p11), %v3383_v32 }
  0x3b PF: > { %s3384_s12 = sshll.u32 %s4380_s14, 12  ;;  %v4563_v33 = vld [vmem:[%s4555_s26] sm:$0xff]  ;;  %v4569_v35 = vld [vmem:[%s4555_s26 + $0x8] sm:$0xff]  ;;  %v4613_v4 = vld [vmem:[%s4555_s26 + $0x10] sm:$0xff]  ;;  %p3674_p12 = scmp.ne.s32.totalorder %s4380_s14, 1 }
  0x3c   : > { %v4566_v34 = vld [vmem:[%s4555_s26 + $0x80] sm:$0xff]  ;;  %s334_s15 = sshra.s32 %s3384_s12, 3  ;;  %v4574_v37 = vld [vmem:[%s4555_s26 + $0x88] sm:$0xff]  ;;  %v4616_v5 = vld [vmem:[%s4555_s26 + $0x90] sm:$0xff] }
  0x3d   : > { %v3387_v36 = vcombine.high %v4563_v33, %v4566_v34  ;;  %s3385_s29 = sshll.u32 %s334_s15, 2  ;;  %v3389_v38 = vcombine.high %v4569_v35, %v4574_v37  ;;  %v4620_v7 = vld [vmem:[%s4555_s26 + $0x18] sm:$0xff]  ;;  %v3386_v11 = vcombine.low %v4563_v33, %v4566_v34  ;;  %v3388_v12 = vcombine.low %v4569_v35, %v4574_v37 }
  0x3e   : > { %s4581_s5 = scalar_lea.vmem %s4928_s1, %s3385_s29  ;;  %v4623_v8 = vld [vmem:[%s4555_s26 + $0x98] sm:$0xff]  ;;  %v3391_v15 = vcombine.high %v4613_v4, %v4616_v5 }
  0x3f   : > { %2612 = vmatprep.mubr.bf16.mxu0 %v3387_v36  ;;  %v4086_v39 = vld [vmem:[%s4581_s5 + $0x40] sm:$0xff]   ;;  %2653 = vmatprep.mubr.bf16.mxu1 %v3389_v38  ;;  %v4090_v43 = vld [vmem:[%s4581_s5 + $0x48] sm:$0xff]   ;;  %v4094_v47 = vld [vmem:[%s4581_s5 + $0x50] sm:$0xff]   ;;  %v3393_v17 = vcombine.high %v4620_v7, %v4623_v8 }
  0x40   : > { %v4087_v40 = vld [vmem:[%s4581_s5 + $0xc0] sm:$0xff]   ;;  %3678 = vmatprep.subr.bf16.mxu0 %v4086_v39  ;;  %v4091_v44 = vld [vmem:[%s4581_s5 + $0xc8] sm:$0xff]   ;;  %v4095_v48 = vld [vmem:[%s4581_s5 + $0xd0] sm:$0xff]  }
  0x41   : > { %v4088_v41 = vld [vmem:[%s4581_s5] sm:$0xff]   ;;  %3700 = vmatprep.subr.bf16.mxu1 %v4087_v40  ;;  %v4092_v45 = vld [vmem:[%s4581_s5 + $0x8] sm:$0xff]   ;;  %v4096_v49 = vld [vmem:[%s4581_s5 + $0x10] sm:$0xff]  }
  0x42   : > { %v4089_v42 = vld [vmem:[%s4581_s5 + $0x80] sm:$0xff]   ;;  %3679 = vmatpush3.bf16.msra.mxu0 %v4088_v41  ;;  %v4093_v46 = vld [vmem:[%s4581_s5 + $0x88] sm:$0xff]   ;;  %v4097_v50 = vld [vmem:[%s4581_s5 + $0x90] sm:$0xff]  }
  0x43   : > { %3701 = vmatpush3.bf16.msra.mxu1 %v4089_v42  ;;  %3680 = vmatprep.subr.bf16.mxu0 %v4090_v43  ;;  %v4098_v51 = vld [vmem:[%s4581_s5 + $0x58] sm:$0xff]   ;;  %v4102_v55 = vld [vmem:[%s4581_s5 + $0x60] sm:$0xff]   ;;  %v4106_v59 = vld [vmem:[%s4581_s5 + $0x68] sm:$0xff]  }
  0x44   : > { %3702 = vmatprep.subr.bf16.mxu1 %v4091_v44  ;;  %v4099_v52 = vld [vmem:[%s4581_s5 + $0xd8] sm:$0xff]   ;;  %v4103_v56 = vld [vmem:[%s4581_s5 + $0xe0] sm:$0xff]   ;;  %v4107_v60 = vld [vmem:[%s4581_s5 + $0xe8] sm:$0xff]  }
  0x45   : > { %v4100_v53 = vld [vmem:[%s4581_s5 + $0x18] sm:$0xff]   ;;  %v4104_v57 = vld [vmem:[%s4581_s5 + $0x20] sm:$0xff]   ;;  %v4108_v61 = vld [vmem:[%s4581_s5 + $0x28] sm:$0xff]  }
  0x46   : > { %3681 = vmatpush3.bf16.msra.mxu0 %v4092_v45  ;;  %v4101_v54 = vld [vmem:[%s4581_s5 + $0x98] sm:$0xff]   ;;  %v4105_v58 = vld [vmem:[%s4581_s5 + $0xa0] sm:$0xff]   ;;  %v4109_v62 = vld [vmem:[%s4581_s5 + $0xa8] sm:$0xff]  }
  0x47   : > { %3703 = vmatpush3.bf16.msra.mxu1 %v4093_v46  ;;  %3682 = vmatprep.subr.bf16.mxu0 %v4094_v47  ;;  %v4110_v63 = vld [vmem:[%s4581_s5 + $0x70] sm:$0xff]   ;;  %v4114_v3 = vld [vmem:[%s4581_s5 + $0x78] sm:$0xff]   ;;  %v4118_v13 = vld [vmem:[%s4581_s5 + $0x140] sm:$0xff]  }
  0x48   : > { %3704 = vmatprep.subr.bf16.mxu1 %v4095_v48  ;;  %v4111_v0 = vld [vmem:[%s4581_s5 + $0xf0] sm:$0xff]   ;;  %v4115_v6 = vld [vmem:[%s4581_s5 + $0xf8] sm:$0xff]   ;;  %v4119_v14 = vld [vmem:[%s4581_s5 + $0x1c0] sm:$0xff]  }
  0x49   : > { %v4112_v1 = vld [vmem:[%s4581_s5 + $0x30] sm:$0xff]   ;;  %v4116_v9 = vld [vmem:[%s4581_s5 + $0x38] sm:$0xff]   ;;  %v4120_v16 = vld [vmem:[%s4581_s5 + $0x100] sm:$0xff]  }
  0x4a   : > { %3683 = vmatpush3.bf16.msra.mxu0 %v4096_v49  ;;  %v4113_v2 = vld [vmem:[%s4581_s5 + $0xb0] sm:$0xff]   ;;  %v4117_v10 = vld [vmem:[%s4581_s5 + $0xb8] sm:$0xff]   ;;  %v4121_v18 = vld [vmem:[%s4581_s5 + $0x180] sm:$0xff]  }
  0x4b   : > { %3705 = vmatpush3.bf16.msra.mxu1 %v4097_v50  ;;  %3684 = vmatprep.subr.bf16.mxu0 %v4098_v51  ;;  %v4122_v19 = vld [vmem:[%s4581_s5 + $0x148] sm:$0xff]   ;;  %v4126_v23 = vld [vmem:[%s4581_s5 + $0x150] sm:$0xff]   ;;  %v4130_v27 = vld [vmem:[%s4581_s5 + $0x158] sm:$0xff]   ;;  %v3390_v51 = vcombine.low %v4613_v4, %v4616_v5 }
  0x4c   : > { %3706 = vmatprep.subr.bf16.mxu1 %v4099_v52  ;;  %v4123_v20 = vld [vmem:[%s4581_s5 + $0x1c8] sm:$0xff]   ;;  %v4127_v24 = vld [vmem:[%s4581_s5 + $0x1d0] sm:$0xff]   ;;  %v4131_v28 = vld [vmem:[%s4581_s5 + $0x1d8] sm:$0xff]   ;;  %v3392_v52 = vcombine.low %v4620_v7, %v4623_v8 }
  0x4d   : > { %v4124_v21 = vld [vmem:[%s4581_s5 + $0x108] sm:$0xff]   ;;  %v4128_v25 = vld [vmem:[%s4581_s5 + $0x110] sm:$0xff]   ;;  %v4132_v29 = vld [vmem:[%s4581_s5 + $0x118] sm:$0xff]  }
  0x4e   : > { %3685 = vmatpush3.bf16.msra.mxu0 %v4100_v53  ;;  %v4125_v22 = vld [vmem:[%s4581_s5 + $0x188] sm:$0xff]   ;;  %v4129_v26 = vld [vmem:[%s4581_s5 + $0x190] sm:$0xff]   ;;  %v4133_v30 = vld [vmem:[%s4581_s5 + $0x198] sm:$0xff]  }
  0x4f   : > { %3707 = vmatpush3.bf16.msra.mxu1 %v4101_v54  ;;  %3686 = vmatprep.subr.bf16.mxu0 %v4102_v55  ;;  %v4134_v31 = vld [vmem:[%s4581_s5 + $0x160] sm:$0xff]   ;;  %v4138_v35 = vld [vmem:[%s4581_s5 + $0x168] sm:$0xff]   ;;  %v4142_v39 = vld [vmem:[%s4581_s5 + $0x170] sm:$0xff]  }
  0x50   : > { %3708 = vmatprep.subr.bf16.mxu1 %v4103_v56  ;;  %v4135_v32 = vld [vmem:[%s4581_s5 + $0x1e0] sm:$0xff]   ;;  %v4139_v36 = vld [vmem:[%s4581_s5 + $0x1e8] sm:$0xff]   ;;  %v4143_v40 = vld [vmem:[%s4581_s5 + $0x1f0] sm:$0xff]  }
  0x51   : > { %v4136_v33 = vld [vmem:[%s4581_s5 + $0x120] sm:$0xff]   ;;  %v4140_v37 = vld [vmem:[%s4581_s5 + $0x128] sm:$0xff]   ;;  %v4144_v41 = vld [vmem:[%s4581_s5 + $0x130] sm:$0xff]  }
  0x52   : > { %3687 = vmatpush3.bf16.msra.mxu0 %v4104_v57  ;;  %v4137_v34 = vld [vmem:[%s4581_s5 + $0x1a0] sm:$0xff]   ;;  %v4141_v38 = vld [vmem:[%s4581_s5 + $0x1a8] sm:$0xff]   ;;  %v4145_v42 = vld [vmem:[%s4581_s5 + $0x1b0] sm:$0xff]  }
  0x53   : > { %3709 = vmatpush3.bf16.msra.mxu1 %v4105_v58  ;;  %3688 = vmatprep.subr.bf16.mxu0 %v4106_v59  ;;  %v4146_v43 = vld [vmem:[%s4581_s5 + $0x178] sm:$0xff]   ;;  %v4665_v44 = vld [vmem:[%s4555_s26 + $0x20] sm:$0xff]  ;;  %v4150_v53 = vld [vmem:[%s4581_s5 + $0x240] sm:$0xff]  }
  0x54   : > { %3710 = vmatprep.subr.bf16.mxu1 %v4107_v60  ;;  %v4668_v45 = vld [vmem:[%s4555_s26 + $0xa0] sm:$0xff]  ;;  %v4147_v46 = vld [vmem:[%s4581_s5 + $0x1f8] sm:$0xff]   ;;  %v4151_v54 = vld [vmem:[%s4581_s5 + $0x2c0] sm:$0xff]  }
  0x55   : > { %v4672_v47 = vld [vmem:[%s4555_s26 + $0x28] sm:$0xff]  ;;  %v3395_v55 = vcombine.high %v4665_v44, %v4668_v45  ;;  %v4152_v56 = vld [vmem:[%s4581_s5 + $0x200] sm:$0xff]   ;;  %v4154_v59 = vld [vmem:[%s4581_s5 + $0x248] sm:$0xff]  }
  0x56   : > { %3689 = vmatpush3.bf16.msra.mxu0 %v4108_v61  ;;  %v4675_v48 = vld [vmem:[%s4555_s26 + $0xa8] sm:$0xff]  ;;  %v4153_v58 = vld [vmem:[%s4581_s5 + $0x280] sm:$0xff]   ;;  %v4155_v60 = vld [vmem:[%s4581_s5 + $0x2c8] sm:$0xff]  }
  0x57   : > { %3711 = vmatpush3.bf16.msra.mxu1 %v4109_v62  ;;  %3690 = vmatprep.subr.bf16.mxu0 %v4110_v63  ;;  %v4148_v49 = vld [vmem:[%s4581_s5 + $0x138] sm:$0xff]   ;;  %v3397_v57 = vcombine.high %v4672_v47, %v4675_v48  ;;  %v4156_v61 = vld [vmem:[%s4581_s5 + $0x208] sm:$0xff]   ;;  %v4158_v63 = vld [vmem:[%s4581_s5 + $0x250] sm:$0xff]  }
  0x58   : > { %3712 = vmatprep.subr.bf16.mxu1 %v4111_v0  ;;  %v4149_v50 = vld [vmem:[%s4581_s5 + $0x1b8] sm:$0xff]   ;;  %v4157_v62 = vld [vmem:[%s4581_s5 + $0x288] sm:$0xff]   ;;  %v4159_v0 = vld [vmem:[%s4581_s5 + $0x2d0] sm:$0xff]  }
  0x59   : > { %v4163_v4 = vld [vmem:[%s4581_s5 + $0x2d8] sm:$0xff]   ;;  %v4166_v7 = vld [vmem:[%s4581_s5 + $0x260] sm:$0xff]  }
  0x5a   : > { %3691 = vmatpush3.bf16.msra.mxu0 %v4112_v1  ;;  %v4160_v1 = vld [vmem:[%s4581_s5 + $0x210] sm:$0xff]   ;;  %v4164_v5 = vld [vmem:[%s4581_s5 + $0x218] sm:$0xff]   ;;  %v4167_v8 = vld [vmem:[%s4581_s5 + $0x2e0] sm:$0xff]  }
  0x5b   : > { %3713 = vmatpush3.bf16.msra.mxu1 %v4113_v2  ;;  %3692 = vmatprep.subr.bf16.mxu0 %v4114_v3  ;;  %v4161_v2 = vld [vmem:[%s4581_s5 + $0x290] sm:$0xff]   ;;  %v4162_v3 = vld [vmem:[%s4581_s5 + $0x258] sm:$0xff]  }
  0x5c   : > { %3714 = vmatprep.subr.bf16.mxu1 %v4115_v6  ;;  %v4165_v6 = vld [vmem:[%s4581_s5 + $0x298] sm:$0xff]  }
  0x5e   : > { %3693 = vmatpush3.bf16.msra.mxu0 %v4116_v9  ;;  %v4168_v9 = vld [vmem:[%s4581_s5 + $0x220] sm:$0xff]  }
  0x5f   : > { %3715 = vmatpush3.bf16.msra.mxu1 %v4117_v10  ;;  %3722 = vmatprep.subr.bf16.mxu0 %v4118_v13  ;;  %v4169_v10 = vld [vmem:[%s4581_s5 + $0x2a0] sm:$0xff]   ;;  %v4172_v13 = vld [vmem:[%s4581_s5 + $0x228] sm:$0xff]  }
  0x60   : > { %3744 = vmatprep.subr.bf16.mxu1 %v4119_v14  ;;  %v4173_v14 = vld [vmem:[%s4581_s5 + $0x2a8] sm:$0xff]  }
  0x61   : > { %2613 = vmatmul.mubr.bf16.vlgmr.msra.gmra.mrb[0].mxu0 %v3386_v11  ;;  %v4170_v11 = vld [vmem:[%s4581_s5 + $0x268] sm:$0xff]  }
  0x62   : > { %2654 = vmatmul.mubr.bf16.vlgmr.msra.gmra.mrb[0].mxu1 %v3388_v12  ;;  %3723 = vmatpush3.bf16.msra.mxu0 %v4120_v16  ;;  %v4171_v12 = vld [vmem:[%s4581_s5 + $0x2e8] sm:$0xff]   ;;  %v4175_v16 = vld [vmem:[%s4581_s5 + $0x2f0] sm:$0xff]  }
  0x63   : > { %3745 = vmatpush3.bf16.msra.mxu1 %v4121_v18  ;;  %2694 = vmatprep.mubr.bf16.mxu0 %v3391_v15  ;;  %v4174_v15 = vld [vmem:[%s4581_s5 + $0x270] sm:$0xff]  }
  0x64   : > { %3724 = vmatprep.subr.bf16.mxu0 %v4122_v19  ;;  %2735 = vmatprep.mubr.bf16.mxu1 %v3393_v17  ;;  %v4176_v17 = vld [vmem:[%s4581_s5 + $0x230] sm:$0xff]   ;;  %v4178_v19 = vld [vmem:[%s4581_s5 + $0x278] sm:$0xff]  }
  0x65   : > { %3746 = vmatprep.subr.bf16.mxu1 %v4123_v20  ;;  %v4177_v18 = vld [vmem:[%s4581_s5 + $0x2b0] sm:$0xff]   ;;  %v4179_v20 = vld [vmem:[%s4581_s5 + $0x2f8] sm:$0xff]  }
  0x66   : > { %3725 = vmatpush3.bf16.msra.mxu0 %v4124_v21  ;;  %v4180_v21 = vld [vmem:[%s4581_s5 + $0x238] sm:$0xff]  }
  0x67   : > { %3747 = vmatpush3.bf16.msra.mxu1 %v4125_v22  ;;  %3726 = vmatprep.subr.bf16.mxu0 %v4126_v23  ;;  %v4181_v22 = vld [vmem:[%s4581_s5 + $0x2b8] sm:$0xff]   ;;  %v3394_v23 = vcombine.low %v4665_v44, %v4668_v45  ;;  %v4201_v44 = vld [vmem:[%s4581_s5 + $0x3a0] sm:$0xff]   ;;  %v4202_v45 = vld [vmem:[%s4581_s5 + $0x368] sm:$0xff]  }
  0x68   : > { %3748 = vmatprep.subr.bf16.mxu1 %v4127_v24  ;;  %v3396_v24 = vcombine.low %v4672_v47, %v4675_v48  ;;  %v4204_v47 = vld [vmem:[%s4581_s5 + $0x328] sm:$0xff]  }
  0x69   : > { %v4205_v48 = vld [vmem:[%s4581_s5 + $0x3a8] sm:$0xff]  }
  0x6a   : > { %3727 = vmatpush3.bf16.msra.mxu0 %v4128_v25  ;;  %v4182_v25 = vld [vmem:[%s4581_s5 + $0x340] sm:$0xff]  }
  0x6b   : > { %3749 = vmatpush3.bf16.msra.mxu1 %v4129_v26  ;;  %3728 = vmatprep.subr.bf16.mxu0 %v4130_v27  ;;  %v4183_v26 = vld [vmem:[%s4581_s5 + $0x3c0] sm:$0xff]  }
  0x6c   : > { %3750 = vmatprep.subr.bf16.mxu1 %v4131_v28  ;;  %v4184_v27 = vld [vmem:[%s4581_s5 + $0x300] sm:$0xff]  }
  0x6d   : > { %v4185_v28 = vld [vmem:[%s4581_s5 + $0x380] sm:$0xff]  }
  0x6e   : > { %3729 = vmatpush3.bf16.msra.mxu0 %v4132_v29  ;;  %v4186_v29 = vld [vmem:[%s4581_s5 + $0x348] sm:$0xff]  }
  0x6f   : > { %3751 = vmatpush3.bf16.msra.mxu1 %v4133_v30  ;;  %3730 = vmatprep.subr.bf16.mxu0 %v4134_v31  ;;  %v4187_v30 = vld [vmem:[%s4581_s5 + $0x3c8] sm:$0xff]  }
  0x70   : > { %3752 = vmatprep.subr.bf16.mxu1 %v4135_v32  ;;  %v4188_v31 = vld [vmem:[%s4581_s5 + $0x308] sm:$0xff]  }
  0x71   : > { %v4189_v32 = vld [vmem:[%s4581_s5 + $0x388] sm:$0xff]  }
  0x72   : > { %3731 = vmatpush3.bf16.msra.mxu0 %v4136_v33  ;;  %v4190_v33 = vld [vmem:[%s4581_s5 + $0x350] sm:$0xff]  }
  0x73   : > { %3753 = vmatpush3.bf16.msra.mxu1 %v4137_v34  ;;  %3732 = vmatprep.subr.bf16.mxu0 %v4138_v35  ;;  %v4191_v34 = vld [vmem:[%s4581_s5 + $0x3d0] sm:$0xff]  }
  0x74   : > { %3754 = vmatprep.subr.bf16.mxu1 %v4139_v36  ;;  %v4192_v35 = vld [vmem:[%s4581_s5 + $0x310] sm:$0xff]  }
  0x75   : > { %v4193_v36 = vld [vmem:[%s4581_s5 + $0x390] sm:$0xff]  }
  0x76   : > { %3733 = vmatpush3.bf16.msra.mxu0 %v4140_v37  ;;  %v4194_v37 = vld [vmem:[%s4581_s5 + $0x358] sm:$0xff]  }
  0x77   : > { %3755 = vmatpush3.bf16.msra.mxu1 %v4141_v38  ;;  %3734 = vmatprep.subr.bf16.mxu0 %v4142_v39  ;;  %v4195_v38 = vld [vmem:[%s4581_s5 + $0x3d8] sm:$0xff]  }
  0x78   : > { %3756 = vmatprep.subr.bf16.mxu1 %v4143_v40  ;;  %v4196_v39 = vld [vmem:[%s4581_s5 + $0x318] sm:$0xff]  }
  0x79   : > { %v4197_v40 = vld [vmem:[%s4581_s5 + $0x398] sm:$0xff]  }
  0x7a   : > { %3735 = vmatpush3.bf16.msra.mxu0 %v4144_v41  ;;  %v4198_v41 = vld [vmem:[%s4581_s5 + $0x360] sm:$0xff]  }
  0x7b   : > { %3757 = vmatpush3.bf16.msra.mxu1 %v4145_v42  ;;  %3736 = vmatprep.subr.bf16.mxu0 %v4146_v43  ;;  %v4199_v42 = vld [vmem:[%s4581_s5 + $0x3e0] sm:$0xff]  }
  0x7c   : > { %3758 = vmatprep.subr.bf16.mxu1 %v4147_v46  ;;  %v4200_v43 = vld [vmem:[%s4581_s5 + $0x320] sm:$0xff]   ;;  %v4203_v46 = vld [vmem:[%s4581_s5 + $0x3e8] sm:$0xff]  }
  0x7e   : > { %3737 = vmatpush3.bf16.msra.mxu0 %v4148_v49  ;;  %v4206_v49 = vld [vmem:[%s4581_s5 + $0x370] sm:$0xff]  }
  0x7f   : > { %3759 = vmatpush3.bf16.msra.mxu1 %v4149_v50  ;;  %3766 = vmatprep.subr.bf16.mxu0 %v4150_v53  ;;  %v4207_v50 = vld [vmem:[%s4581_s5 + $0x3f0] sm:$0xff]   ;;  %v4210_v53 = vld [vmem:[%s4581_s5 + $0x378] sm:$0xff]  }
  0x80   : > { %3788 = vmatprep.subr.bf16.mxu1 %v4151_v54  ;;  %v4211_v54 = vld [vmem:[%s4581_s5 + $0x3f8] sm:$0xff]  }
  0x81   : > { %2695 = vmatmul.mubr.bf16.vlgmr.msra.gmra.mrb[4].mxu0 %v3390_v51  ;;  %v4208_v51 = vld [vmem:[%s4581_s5 + $0x330] sm:$0xff]  }
  0x82   : > { %2736 = vmatmul.mubr.bf16.vlgmr.msra.gmra.mrb[4].mxu1 %v3392_v52  ;;  %3767 = vmatpush3.bf16.msra.mxu0 %v4152_v56  ;;  %v4209_v52 = vld [vmem:[%s4581_s5 + $0x3b0] sm:$0xff]   ;;  %v4213_v56 = vld [vmem:[%s4581_s5 + $0x3b8] sm:$0xff]  }
  0x83   : > { %3789 = vmatpush3.bf16.msra.mxu1 %v4153_v58  ;;  %2776 = vmatprep.mubr.bf16.mxu0 %v3395_v55  ;;  %v4212_v55 = vld [vmem:[%s4581_s5 + $0x338] sm:$0xff]   ;;  %v874_v58 = vld [vmem:[%s4555_s26 + $0xb0] sm:$0xff] }
  0x84   : > { %3768 = vmatprep.subr.bf16.mxu0 %v4154_v59  ;;  %2817 = vmatprep.mubr.bf16.mxu1 %v3397_v57  ;;  %v858_v57 = vld [vmem:[%s4555_s26 + $0x30] sm:$0xff]  ;;  %v859_v59 = vld [vmem:[%s4555_s26 + $0x38] sm:$0xff] }
  0x85   : > { %3790 = vmatprep.subr.bf16.mxu1 %v4155_v60  ;;  %v3398_v60 = vcombine.low %v858_v57, %v874_v58 }
  0x86   : > { %3769 = vmatpush3.bf16.msra.mxu0 %v4156_v61  ;;  %v3399_v61 = vcombine.high %v858_v57, %v874_v58  ;;  %v4262_v57 = vld [vmem:[%s4581_s5 + $0x560] sm:$0xff]  }
  0x87   : > { %3791 = vmatpush3.bf16.msra.mxu1 %v4157_v62  ;;  %3770 = vmatprep.subr.bf16.mxu0 %v4158_v63  ;;  %v875_v62 = vld [vmem:[%s4555_s26 + $0xb8] sm:$0xff]  ;;  %v4263_v58 = vld [vmem:[%s4581_s5 + $0x5e0] sm:$0xff]  }
  0x88   : > { %3792 = vmatprep.subr.bf16.mxu1 %v4159_v0  ;;  %v3400_v63 = vcombine.low %v859_v59, %v875_v62  ;;  %v3401_v0 = vcombine.high %v859_v59, %v875_v62  ;;  %v4264_v59 = vld [vmem:[%s4581_s5 + $0x520] sm:$0xff]   ;;  %v4267_v62 = vld [vmem:[%s4581_s5 + $0x5e8] sm:$0xff]  }
  0x8a   : > { %3771 = vmatpush3.bf16.msra.mxu0 %v4160_v1  ;;  %v4214_v1 = vld [vmem:[%s4581_s5 + $0x440] sm:$0xff]  }
  0x8b   : > { %3793 = vmatpush3.bf16.msra.mxu1 %v4161_v2  ;;  %3772 = vmatprep.subr.bf16.mxu0 %v4162_v3  ;;  %v4215_v2 = vld [vmem:[%s4581_s5 + $0x4c0] sm:$0xff]  }
  0x8c   : > { %3794 = vmatprep.subr.bf16.mxu1 %v4163_v4  ;;  %v4216_v3 = vld [vmem:[%s4581_s5 + $0x400] sm:$0xff]  }
  0x8d   : > { %v4217_v4 = vld [vmem:[%s4581_s5 + $0x480] sm:$0xff]  }
  0x8e   : > { %3773 = vmatpush3.bf16.msra.mxu0 %v4164_v5  ;;  %v4218_v5 = vld [vmem:[%s4581_s5 + $0x448] sm:$0xff]  }
  0x8f   : > { %3795 = vmatpush3.bf16.msra.mxu1 %v4165_v6  ;;  %3774 = vmatprep.subr.bf16.mxu0 %v4166_v7  ;;  %v4219_v6 = vld [vmem:[%s4581_s5 + $0x4c8] sm:$0xff]  }
  0x90   : > { %3796 = vmatprep.subr.bf16.mxu1 %v4167_v8  ;;  %v4220_v7 = vld [vmem:[%s4581_s5 + $0x408] sm:$0xff]  }
  0x91   : > { %v4221_v8 = vld [vmem:[%s4581_s5 + $0x488] sm:$0xff]  }
  0x92   : > { %3775 = vmatpush3.bf16.msra.mxu0 %v4168_v9  ;;  %v4222_v9 = vld [vmem:[%s4581_s5 + $0x450] sm:$0xff]  }
  0x93   : > { %3797 = vmatpush3.bf16.msra.mxu1 %v4169_v10  ;;  %3776 = vmatprep.subr.bf16.mxu0 %v4170_v11  ;;  %v4223_v10 = vld [vmem:[%s4581_s5 + $0x4d0] sm:$0xff]  }
  0x94   : > { %3798 = vmatprep.subr.bf16.mxu1 %v4171_v12  ;;  %v4224_v11 = vld [vmem:[%s4581_s5 + $0x410] sm:$0xff]  }
  0x95   : > { %v4225_v12 = vld [vmem:[%s4581_s5 + $0x490] sm:$0xff]  }
  0x96   : > { %3777 = vmatpush3.bf16.msra.mxu0 %v4172_v13  ;;  %v4226_v13 = vld [vmem:[%s4581_s5 + $0x458] sm:$0xff]  }
  0x97   : > { %3799 = vmatpush3.bf16.msra.mxu1 %v4173_v14  ;;  %3778 = vmatprep.subr.bf16.mxu0 %v4174_v15  ;;  %v4227_v14 = vld [vmem:[%s4581_s5 + $0x4d8] sm:$0xff]  }
  0x98   : > { %3800 = vmatprep.subr.bf16.mxu1 %v4175_v16  ;;  %v4228_v15 = vld [vmem:[%s4581_s5 + $0x418] sm:$0xff]  }
  0x99   : > { %v4229_v16 = vld [vmem:[%s4581_s5 + $0x498] sm:$0xff]  }
  0x9a   : > { %3779 = vmatpush3.bf16.msra.mxu0 %v4176_v17  ;;  %v4230_v17 = vld [vmem:[%s4581_s5 + $0x460] sm:$0xff]  }
  0x9b   : > { %3801 = vmatpush3.bf16.msra.mxu1 %v4177_v18  ;;  %3780 = vmatprep.subr.bf16.mxu0 %v4178_v19  ;;  %v4231_v18 = vld [vmem:[%s4581_s5 + $0x4e0] sm:$0xff]  }
  0x9c   : > { %3802 = vmatprep.subr.bf16.mxu1 %v4179_v20  ;;  %v4232_v19 = vld [vmem:[%s4581_s5 + $0x420] sm:$0xff]  }
  0x9d   : > { %v4233_v20 = vld [vmem:[%s4581_s5 + $0x4a0] sm:$0xff]  }
  0x9e   : > { %3781 = vmatpush3.bf16.msra.mxu0 %v4180_v21  ;;  %v4234_v21 = vld [vmem:[%s4581_s5 + $0x468] sm:$0xff]  }
  0x9f   : > { %3803 = vmatpush3.bf16.msra.mxu1 %v4181_v22  ;;  %3810 = vmatprep.subr.bf16.mxu0 %v4182_v25  ;;  %v4235_v22 = vld [vmem:[%s4581_s5 + $0x4e8] sm:$0xff]   ;;  %v4238_v25 = vld [vmem:[%s4581_s5 + $0x470] sm:$0xff]  }
  0xa0   : > { %3832 = vmatprep.subr.bf16.mxu1 %v4183_v26  ;;  %v4239_v26 = vld [vmem:[%s4581_s5 + $0x4f0] sm:$0xff]  }
  0xa1   : > { %2777 = vmatmul.mubr.bf16.vlgmr.msra.gmra.mrb[8].mxu0 %v3394_v23  ;;  %v4236_v23 = vld [vmem:[%s4581_s5 + $0x428] sm:$0xff]  }
  0xa2   : > { %2818 = vmatmul.mubr.bf16.vlgmr.msra.gmra.mrb[8].mxu1 %v3396_v24  ;;  %3811 = vmatpush3.bf16.msra.mxu0 %v4184_v27  ;;  %v4237_v24 = vld [vmem:[%s4581_s5 + $0x4a8] sm:$0xff]   ;;  %v4240_v27 = vld [vmem:[%s4581_s5 + $0x430] sm:$0xff]  }
  0xa3   : > { %3833 = vmatpush3.bf16.msra.mxu1 %v4185_v28  ;;  %3812 = vmatprep.subr.bf16.mxu0 %v4186_v29  ;;  %v4241_v28 = vld [vmem:[%s4581_s5 + $0x4b0] sm:$0xff]   ;;  %v4242_v29 = vld [vmem:[%s4581_s5 + $0x478] sm:$0xff]  }
  0xa4   : > { %3834 = vmatprep.subr.bf16.mxu1 %v4187_v30  ;;  %2858 = vmatprep.mubr.bf16.mxu0 %v3399_v61  ;;  %v4243_v30 = vld [vmem:[%s4581_s5 + $0x4f8] sm:$0xff]   ;;  %v4266_v61 = vld [vmem:[%s4581_s5 + $0x568] sm:$0xff]  }
  0xa5   : > { %2899 = vmatprep.mubr.bf16.mxu1 %v3401_v0  ;;  %v4269_v0 = vld [vmem:[%s4581_s5 + $0x5a8] sm:$0xff]  }
  0xa6   : > { %3813 = vmatpush3.bf16.msra.mxu0 %v4188_v31  ;;  %v4244_v31 = vld [vmem:[%s4581_s5 + $0x438] sm:$0xff]  }
  0xa7   : > { %3835 = vmatpush3.bf16.msra.mxu1 %v4189_v32  ;;  %3814 = vmatprep.subr.bf16.mxu0 %v4190_v33  ;;  %v4245_v32 = vld [vmem:[%s4581_s5 + $0x4b8] sm:$0xff]   ;;  %v860_v33 = vld [vmem:[%s4555_s26 + $0x40] sm:$0xff] }
  0xa8   : > { %3836 = vmatprep.subr.bf16.mxu1 %v4191_v34  ;;  %v876_v34 = vld [vmem:[%s4555_s26 + $0xc0] sm:$0xff] }
  0xaa   : > { %3815 = vmatpush3.bf16.msra.mxu0 %v4192_v35  ;;  %v3402_v35 = vcombine.low %v860_v33, %v876_v34 }
  0xab   : > { %3837 = vmatpush3.bf16.msra.mxu1 %v4193_v36  ;;  %3816 = vmatprep.subr.bf16.mxu0 %v4194_v37  ;;  %v3403_v36 = vcombine.high %v860_v33, %v876_v34  ;;  %v861_v37 = vld [vmem:[%s4555_s26 + $0x48] sm:$0xff]  ;;  %v4294_v33 = vld [vmem:[%s4581_s5 + $0x660] sm:$0xff]  }
  0xac   : > { %3838 = vmatprep.subr.bf16.mxu1 %v4195_v38  ;;  %v877_v38 = vld [vmem:[%s4555_s26 + $0xc8] sm:$0xff]  ;;  %v4295_v34 = vld [vmem:[%s4581_s5 + $0x6e0] sm:$0xff]  }
  0xae   : > { %3817 = vmatpush3.bf16.msra.mxu0 %v4196_v39  ;;  %v3404_v39 = vcombine.low %v861_v37, %v877_v38 }
  0xaf   : > { %3839 = vmatpush3.bf16.msra.mxu1 %v4197_v40  ;;  %3818 = vmatprep.subr.bf16.mxu0 %v4198_v41  ;;  %v3405_v40 = vcombine.high %v861_v37, %v877_v38  ;;  %v4246_v41 = vld [vmem:[%s4581_s5 + $0x540] sm:$0xff]   ;;  %v4298_v37 = vld [vmem:[%s4581_s5 + $0x668] sm:$0xff]  }
  0xb0   : > { %3840 = vmatprep.subr.bf16.mxu1 %v4199_v42  ;;  %v4247_v42 = vld [vmem:[%s4581_s5 + $0x5c0] sm:$0xff]   ;;  %v4299_v38 = vld [vmem:[%s4581_s5 + $0x6e8] sm:$0xff]  }
  0xb2   : > { %3819 = vmatpush3.bf16.msra.mxu0 %v4200_v43  ;;  %v4248_v43 = vld [vmem:[%s4581_s5 + $0x500] sm:$0xff]  }
  0xb3   : > { %3841 = vmatpush3.bf16.msra.mxu1 %v4201_v44  ;;  %3820 = vmatprep.subr.bf16.mxu0 %v4202_v45  ;;  %v4249_v44 = vld [vmem:[%s4581_s5 + $0x580] sm:$0xff]   ;;  %v4250_v45 = vld [vmem:[%s4581_s5 + $0x548] sm:$0xff]  }
  0xb4   : > { %3842 = vmatprep.subr.bf16.mxu1 %v4203_v46  ;;  %v4251_v46 = vld [vmem:[%s4581_s5 + $0x5c8] sm:$0xff]  }
  0xb6   : > { %3821 = vmatpush3.bf16.msra.mxu0 %v4204_v47  ;;  %v4252_v47 = vld [vmem:[%s4581_s5 + $0x508] sm:$0xff]  }
  0xb7   : > { %3843 = vmatpush3.bf16.msra.mxu1 %v4205_v48  ;;  %3822 = vmatprep.subr.bf16.mxu0 %v4206_v49  ;;  %v4253_v48 = vld [vmem:[%s4581_s5 + $0x588] sm:$0xff]   ;;  %v4254_v49 = vld [vmem:[%s4581_s5 + $0x550] sm:$0xff]  }
  0xb8   : > { %3844 = vmatprep.subr.bf16.mxu1 %v4207_v50  ;;  %v4255_v50 = vld [vmem:[%s4581_s5 + $0x5d0] sm:$0xff]  }
  0xba   : > { %3823 = vmatpush3.bf16.msra.mxu0 %v4208_v51  ;;  %v4256_v51 = vld [vmem:[%s4581_s5 + $0x510] sm:$0xff]  }
  0xbb   : > { %3845 = vmatpush3.bf16.msra.mxu1 %v4209_v52  ;;  %3824 = vmatprep.subr.bf16.mxu0 %v4210_v53  ;;  %v4257_v52 = vld [vmem:[%s4581_s5 + $0x590] sm:$0xff]   ;;  %v4258_v53 = vld [vmem:[%s4581_s5 + $0x558] sm:$0xff]  }
  0xbc   : > { %3846 = vmatprep.subr.bf16.mxu1 %v4211_v54  ;;  %v4259_v54 = vld [vmem:[%s4581_s5 + $0x5d8] sm:$0xff]  }
  0xbe   : > { %3825 = vmatpush3.bf16.msra.mxu0 %v4212_v55  ;;  %v4260_v55 = vld [vmem:[%s4581_s5 + $0x518] sm:$0xff]  }
  0xbf   : > { %3847 = vmatpush3.bf16.msra.mxu1 %v4213_v56  ;;  %3854 = vmatprep.subr.bf16.mxu0 %v4214_v1  ;;  %v4261_v56 = vld [vmem:[%s4581_s5 + $0x598] sm:$0xff]   ;;  %v4270_v1 = vld [vmem:[%s4581_s5 + $0x570] sm:$0xff]  }
  0xc0   : > { %3876 = vmatprep.subr.bf16.mxu1 %v4215_v2  ;;  %v4271_v2 = vld [vmem:[%s4581_s5 + $0x5f0] sm:$0xff]  }
  0xc1   : > { %2859 = vmatmul.mubr.bf16.vlgmr.msra.gmra.mrb[12].mxu0 %v3398_v60  ;;  %v4265_v60 = vld [vmem:[%s4581_s5 + $0x5a0] sm:$0xff]  }
  0xc2   : > { %2900 = vmatmul.mubr.bf16.vlgmr.msra.gmra.mrb[12].mxu1 %v3400_v63  ;;  %3855 = vmatpush3.bf16.msra.mxu0 %v4216_v3  ;;  %v4268_v63 = vld [vmem:[%s4581_s5 + $0x528] sm:$0xff]   ;;  %v4272_v3 = vld [vmem:[%s4581_s5 + $0x530] sm:$0xff]  }
  0xc3   : > { %3877 = vmatpush3.bf16.msra.mxu1 %v4217_v4  ;;  %3856 = vmatprep.subr.bf16.mxu0 %v4218_v5  ;;  %v4273_v4 = vld [vmem:[%s4581_s5 + $0x5b0] sm:$0xff]   ;;  %v4274_v5 = vld [vmem:[%s4581_s5 + $0x578] sm:$0xff]  }
  0xc4   : > { %3878 = vmatprep.subr.bf16.mxu1 %v4219_v6  ;;  %2940 = vmatprep.mubr.bf16.mxu0 %v3403_v36  ;;  %v4275_v6 = vld [vmem:[%s4581_s5 + $0x5f8] sm:$0xff]   ;;  %v4297_v36 = vld [vmem:[%s4581_s5 + $0x6a0] sm:$0xff]  }
  0xc5   : > { %2981 = vmatprep.mubr.bf16.mxu1 %v3405_v40  ;;  %v4301_v40 = vld [vmem:[%s4581_s5 + $0x6a8] sm:$0xff]  }
  0xc6   : > { %3857 = vmatpush3.bf16.msra.mxu0 %v4220_v7  ;;  %v4276_v7 = vld [vmem:[%s4581_s5 + $0x538] sm:$0xff]  }
  0xc7   : > { %3879 = vmatpush3.bf16.msra.mxu1 %v4221_v8  ;;  %3858 = vmatprep.subr.bf16.mxu0 %v4222_v9  ;;  %v4277_v8 = vld [vmem:[%s4581_s5 + $0x5b8] sm:$0xff]   ;;  %v862_v9 = vld [vmem:[%s4555_s26 + $0x50] sm:$0xff] }
  0xc8   : > { %3880 = vmatprep.subr.bf16.mxu1 %v4223_v10  ;;  %v878_v10 = vld [vmem:[%s4555_s26 + $0xd0] sm:$0xff] }
  0xca   : > { %3859 = vmatpush3.bf16.msra.mxu0 %v4224_v11  ;;  %v863_v11 = vld [vmem:[%s4555_s26 + $0x58] sm:$0xff] }
  0xcb   : > { %3881 = vmatpush3.bf16.msra.mxu1 %v4225_v12  ;;  %3860 = vmatprep.subr.bf16.mxu0 %v4226_v13  ;;  %v879_v12 = vld [vmem:[%s4555_s26 + $0xd8] sm:$0xff]  ;;  %v3406_v13 = vcombine.low %v862_v9, %v878_v10 }
  0xcc   : > { %3882 = vmatprep.subr.bf16.mxu1 %v4227_v14  ;;  %v3407_v14 = vcombine.high %v862_v9, %v878_v10  ;;  %v4326_v9 = vld [vmem:[%s4581_s5 + $0x760] sm:$0xff]  }
  0xce   : > { %3861 = vmatpush3.bf16.msra.mxu0 %v4228_v15  ;;  %v3408_v15 = vcombine.low %v863_v11, %v879_v12 }
  0xcf   : > { %3883 = vmatpush3.bf16.msra.mxu1 %v4229_v16  ;;  %3862 = vmatprep.subr.bf16.mxu0 %v4230_v17  ;;  %v3409_v16 = vcombine.high %v863_v11, %v879_v12  ;;  %v4278_v17 = vld [vmem:[%s4581_s5 + $0x640] sm:$0xff]  }
  0xd0   : > { %3884 = vmatprep.subr.bf16.mxu1 %v4231_v18  ;;  %v4279_v18 = vld [vmem:[%s4581_s5 + $0x6c0] sm:$0xff]  }
  0xd1   : > { %v4327_v11 = vld [vmem:[%s4581_s5 + $0x7e0] sm:$0xff]  }
  0xd2   : > { %3863 = vmatpush3.bf16.msra.mxu0 %v4232_v19  ;;  %v4280_v19 = vld [vmem:[%s4581_s5 + $0x600] sm:$0xff]  }
  0xd3   : > { %3885 = vmatpush3.bf16.msra.mxu1 %v4233_v20  ;;  %3864 = vmatprep.subr.bf16.mxu0 %v4234_v21  ;;  %v4281_v20 = vld [vmem:[%s4581_s5 + $0x680] sm:$0xff]   ;;  %v4282_v21 = vld [vmem:[%s4581_s5 + $0x648] sm:$0xff]  }
  0xd4   : > { %3886 = vmatprep.subr.bf16.mxu1 %v4235_v22  ;;  %v4283_v22 = vld [vmem:[%s4581_s5 + $0x6c8] sm:$0xff]  }
  0xd6   : > { %3865 = vmatpush3.bf16.msra.mxu0 %v4236_v23  ;;  %v4284_v23 = vld [vmem:[%s4581_s5 + $0x608] sm:$0xff]  }
  0xd7   : > { %3887 = vmatpush3.bf16.msra.mxu1 %v4237_v24  ;;  %3866 = vmatprep.subr.bf16.mxu0 %v4238_v25  ;;  %v4285_v24 = vld [vmem:[%s4581_s5 + $0x688] sm:$0xff]   ;;  %v4286_v25 = vld [vmem:[%s4581_s5 + $0x650] sm:$0xff]  }
  0xd8   : > { %3888 = vmatprep.subr.bf16.mxu1 %v4239_v26  ;;  %v4287_v26 = vld [vmem:[%s4581_s5 + $0x6d0] sm:$0xff]  }
  0xda   : > { %3867 = vmatpush3.bf16.msra.mxu0 %v4240_v27  ;;  %v4288_v27 = vld [vmem:[%s4581_s5 + $0x610] sm:$0xff]  }
  0xdb   : > { %3889 = vmatpush3.bf16.msra.mxu1 %v4241_v28  ;;  %3868 = vmatprep.subr.bf16.mxu0 %v4242_v29  ;;  %v4289_v28 = vld [vmem:[%s4581_s5 + $0x690] sm:$0xff]   ;;  %v4290_v29 = vld [vmem:[%s4581_s5 + $0x658] sm:$0xff]  }
  0xdc   : > { %3890 = vmatprep.subr.bf16.mxu1 %v4243_v30  ;;  %v4291_v30 = vld [vmem:[%s4581_s5 + $0x6d8] sm:$0xff]  }
  0xde   : > { %3869 = vmatpush3.bf16.msra.mxu0 %v4244_v31  ;;  %v4292_v31 = vld [vmem:[%s4581_s5 + $0x618] sm:$0xff]  }
  0xdf   : > { %3891 = vmatpush3.bf16.msra.mxu1 %v4245_v32  ;;  %3898 = vmatprep.subr.bf16.mxu0 %v4246_v41  ;;  %v4293_v32 = vld [vmem:[%s4581_s5 + $0x698] sm:$0xff]   ;;  %v4302_v41 = vld [vmem:[%s4581_s5 + $0x670] sm:$0xff]  }
  0xe0   : > { %3920 = vmatprep.subr.bf16.mxu1 %v4247_v42  ;;  %v4303_v42 = vld [vmem:[%s4581_s5 + $0x6f0] sm:$0xff]  }
  0xe1   : > { %2941 = vmatmul.mubr.bf16.vlgmr.msra.gmra.mrb[16].mxu0 %v3402_v35  ;;  %v4296_v35 = vld [vmem:[%s4581_s5 + $0x620] sm:$0xff]  }
  0xe2   : > { %2982 = vmatmul.mubr.bf16.vlgmr.msra.gmra.mrb[16].mxu1 %v3404_v39  ;;  %3899 = vmatpush3.bf16.msra.mxu0 %v4248_v43  ;;  %v4300_v39 = vld [vmem:[%s4581_s5 + $0x628] sm:$0xff]   ;;  %v4304_v43 = vld [vmem:[%s4581_s5 + $0x630] sm:$0xff]  }
  0xe3   : > { %3921 = vmatpush3.bf16.msra.mxu1 %v4249_v44  ;;  %3900 = vmatprep.subr.bf16.mxu0 %v4250_v45  ;;  %v4305_v44 = vld [vmem:[%s4581_s5 + $0x6b0] sm:$0xff]   ;;  %v4306_v45 = vld [vmem:[%s4581_s5 + $0x678] sm:$0xff]  }
  0xe4   : > { %3922 = vmatprep.subr.bf16.mxu1 %v4251_v46  ;;  %3022 = vmatprep.mubr.bf16.mxu0 %v3407_v14  ;;  %v4307_v46 = vld [vmem:[%s4581_s5 + $0x6f8] sm:$0xff]  }
  0xe5   : > { %3063 = vmatprep.mubr.bf16.mxu1 %v3409_v16 }
  0xe6   : > { %3901 = vmatpush3.bf16.msra.mxu0 %v4252_v47  ;;  %v4308_v47 = vld [vmem:[%s4581_s5 + $0x638] sm:$0xff]  }
  0xe7   : > { %3923 = vmatpush3.bf16.msra.mxu1 %v4253_v48  ;;  %3902 = vmatprep.subr.bf16.mxu0 %v4254_v49  ;;  %v4309_v48 = vld [vmem:[%s4581_s5 + $0x6b8] sm:$0xff]   ;;  %v864_v49 = vld [vmem:[%s4555_s26 + $0x60] sm:$0xff] }
  0xe8   : > { %3924 = vmatprep.subr.bf16.mxu1 %v4255_v50  ;;  %v880_v50 = vld [vmem:[%s4555_s26 + $0xe0] sm:$0xff] }
  0xea   : > { %3903 = vmatpush3.bf16.msra.mxu0 %v4256_v51  ;;  %v865_v51 = vld [vmem:[%s4555_s26 + $0x68] sm:$0xff] }
  0xeb   : > { %3925 = vmatpush3.bf16.msra.mxu1 %v4257_v52  ;;  %3904 = vmatprep.subr.bf16.mxu0 %v4258_v53  ;;  %v3410_v52 = vcombine.low %v864_v49, %v880_v50  ;;  %v3411_v53 = vcombine.high %v864_v49, %v880_v50 }
  0xec   : > { %3926 = vmatprep.subr.bf16.mxu1 %v4259_v54  ;;  %v881_v54 = vld [vmem:[%s4555_s26 + $0xe8] sm:$0xff] }
  0xee   : > { %3905 = vmatpush3.bf16.msra.mxu0 %v4260_v55  ;;  %v3412_v55 = vcombine.low %v865_v51, %v881_v54 }
  0xef   : > { %3927 = vmatpush3.bf16.msra.mxu1 %v4261_v56  ;;  %3906 = vmatprep.subr.bf16.mxu0 %v4262_v57  ;;  %v3413_v56 = vcombine.high %v865_v51, %v881_v54  ;;  %v4310_v57 = vld [vmem:[%s4581_s5 + $0x740] sm:$0xff]  }
  0xf0   : > { %3928 = vmatprep.subr.bf16.mxu1 %v4263_v58  ;;  %v4311_v58 = vld [vmem:[%s4581_s5 + $0x7c0] sm:$0xff]  }
  0xf2   : > { %3907 = vmatpush3.bf16.msra.mxu0 %v4264_v59  ;;  %v4312_v59 = vld [vmem:[%s4581_s5 + $0x700] sm:$0xff]  }
  0xf3   : > { %3929 = vmatpush3.bf16.msra.mxu1 %v4265_v60  ;;  %3908 = vmatprep.subr.bf16.mxu0 %v4266_v61  ;;  %v4313_v60 = vld [vmem:[%s4581_s5 + $0x780] sm:$0xff]   ;;  %v4314_v61 = vld [vmem:[%s4581_s5 + $0x748] sm:$0xff]  }
  0xf4   : > { %3930 = vmatprep.subr.bf16.mxu1 %v4267_v62  ;;  %v4315_v62 = vld [vmem:[%s4581_s5 + $0x7c8] sm:$0xff]  }
  0xf6   : > { %3909 = vmatpush3.bf16.msra.mxu0 %v4268_v63  ;;  %v4316_v63 = vld [vmem:[%s4581_s5 + $0x708] sm:$0xff]  }
  0xf7   : > { %3931 = vmatpush3.bf16.msra.mxu1 %v4269_v0  ;;  %3910 = vmatprep.subr.bf16.mxu0 %v4270_v1  ;;  %v4317_v0 = vld [vmem:[%s4581_s5 + $0x788] sm:$0xff]   ;;  %v4318_v1 = vld [vmem:[%s4581_s5 + $0x750] sm:$0xff]  }
  0xf8   : > { %3932 = vmatprep.subr.bf16.mxu1 %v4271_v2  ;;  %v4319_v2 = vld [vmem:[%s4581_s5 + $0x7d0] sm:$0xff]  }
  0xfa   : > { %3911 = vmatpush3.bf16.msra.mxu0 %v4272_v3  ;;  %v4320_v3 = vld [vmem:[%s4581_s5 + $0x710] sm:$0xff]  }
  0xfb   : > { %3933 = vmatpush3.bf16.msra.mxu1 %v4273_v4  ;;  %3912 = vmatprep.subr.bf16.mxu0 %v4274_v5  ;;  %v4321_v4 = vld [vmem:[%s4581_s5 + $0x790] sm:$0xff]   ;;  %v4322_v5 = vld [vmem:[%s4581_s5 + $0x758] sm:$0xff]  }
  0xfc   : > { %3934 = vmatprep.subr.bf16.mxu1 %v4275_v6  ;;  %v4323_v6 = vld [vmem:[%s4581_s5 + $0x7d8] sm:$0xff]  }
  0xfe   : > { %3913 = vmatpush3.bf16.msra.mxu0 %v4276_v7  ;;  %v4324_v7 = vld [vmem:[%s4581_s5 + $0x718] sm:$0xff]  }
  0xff   : > { %3935 = vmatpush3.bf16.msra.mxu1 %v4277_v8  ;;  %3942 = vmatprep.subr.bf16.mxu0 %v4278_v17  ;;  %v4325_v8 = vld [vmem:[%s4581_s5 + $0x798] sm:$0xff]  }
 0x100   : > { %3964 = vmatprep.subr.bf16.mxu1 %v4279_v18 }
 0x101   : > { %3023 = vmatmul.mubr.bf16.vlgmr.msra.gmra.mrb[20].mxu0 %v3406_v13  ;;  %v4328_v13 = vld [vmem:[%s4581_s5 + $0x720] sm:$0xff]  }
 0x102   : > { %3064 = vmatmul.mubr.bf16.vlgmr.msra.gmra.mrb[20].mxu1 %v3408_v15  ;;  %3943 = vmatpush3.bf16.msra.mxu0 %v4280_v19  ;;  %v4329_v15 = vld [vmem:[%s4581_s5 + $0x7a0] sm:$0xff]   ;;  %v4330_v19 = vld [vmem:[%s4581_s5 + $0x768] sm:$0xff]  }
 0x103   : > { %3965 = vmatpush3.bf16.msra.mxu1 %v4281_v20  ;;  %3944 = vmatprep.subr.bf16.mxu0 %v4282_v21  ;;  %v4331_v21 = vld [vmem:[%s4581_s5 + $0x7e8] sm:$0xff]  }
 0x104   : > { %3966 = vmatprep.subr.bf16.mxu1 %v4283_v22  ;;  %3104 = vmatprep.mubr.bf16.mxu0 %v3411_v53 }
 0x105   : > { %3145 = vmatprep.mubr.bf16.mxu1 %v3413_v56 }
 0x106   : > { %3945 = vmatpush3.bf16.msra.mxu0 %v4284_v23 }
 0x107   : > { %3967 = vmatpush3.bf16.msra.mxu1 %v4285_v24  ;;  %3946 = vmatprep.subr.bf16.mxu0 %v4286_v25  ;;  %v4332_v24 = vld [vmem:[%s4581_s5 + $0x728] sm:$0xff]  }
 0x108   : > { %3968 = vmatprep.subr.bf16.mxu1 %v4287_v26  ;;  %v4333_v26 = vld [vmem:[%s4581_s5 + $0x7a8] sm:$0xff]  }
 0x10a   : > { %3947 = vmatpush3.bf16.msra.mxu0 %v4288_v27 }
 0x10b   : > { %3969 = vmatpush3.bf16.msra.mxu1 %v4289_v28  ;;  %3948 = vmatprep.subr.bf16.mxu0 %v4290_v29 }
 0x10c   : > { %3970 = vmatprep.subr.bf16.mxu1 %v4291_v30  ;;  %v4334_v30 = vld [vmem:[%s4581_s5 + $0x770] sm:$0xff]  }
 0x10e   : > { %3949 = vmatpush3.bf16.msra.mxu0 %v4292_v31  ;;  %v4335_v31 = vld [vmem:[%s4581_s5 + $0x7f0] sm:$0xff]  }
 0x10f   : > { %3971 = vmatpush3.bf16.msra.mxu1 %v4293_v32  ;;  %3950 = vmatprep.subr.bf16.mxu0 %v4294_v33  ;;  %v4336_v33 = vld [vmem:[%s4581_s5 + $0x730] sm:$0xff]  }
 0x110   : > { %3972 = vmatprep.subr.bf16.mxu1 %v4295_v34  ;;  %v4337_v34 = vld [vmem:[%s4581_s5 + $0x7b0] sm:$0xff]  }
 0x112   : > { %3951 = vmatpush3.bf16.msra.mxu0 %v4296_v35  ;;  %v4338_v35 = vld [vmem:[%s4581_s5 + $0x778] sm:$0xff]  }
 0x113   : > { %3973 = vmatpush3.bf16.msra.mxu1 %v4297_v36  ;;  %3952 = vmatprep.subr.bf16.mxu0 %v4298_v37  ;;  %v4339_v36 = vld [vmem:[%s4581_s5 + $0x7f8] sm:$0xff]  }
 0x114   : > { %3974 = vmatprep.subr.bf16.mxu1 %v4299_v38  ;;  %v4340_v37 = vld [vmem:[%s4581_s5 + $0x738] sm:$0xff]  }
 0x115   : > { %v4341_v38 = vld [vmem:[%s4581_s5 + $0x7b8] sm:$0xff]  }
 0x116   : > { %3953 = vmatpush3.bf16.msra.mxu0 %v4300_v39  ;;  %v866_v39 = vld [vmem:[%s4555_s26 + $0x70] sm:$0xff] }
 0x117   : > { %3975 = vmatpush3.bf16.msra.mxu1 %v4301_v40  ;;  %3954 = vmatprep.subr.bf16.mxu0 %v4302_v41  ;;  %v882_v40 = vld [vmem:[%s4555_s26 + $0xf0] sm:$0xff] }
 0x118   : > { %3976 = vmatprep.subr.bf16.mxu1 %v4303_v42  ;;  %v3414_v41 = vcombine.low %v866_v39, %v882_v40  ;;  %v3415_v42 = vcombine.high %v866_v39, %v882_v40 }
 0x11a   : > { %3955 = vmatpush3.bf16.msra.mxu0 %v4304_v43  ;;  %v867_v43 = vld [vmem:[%s4555_s26 + $0x78] sm:$0xff] }
 0x11b   : > { %3977 = vmatpush3.bf16.msra.mxu1 %v4305_v44  ;;  %3956 = vmatprep.subr.bf16.mxu0 %v4306_v45  ;;  %v883_v44 = vld [vmem:[%s4555_s26 + $0xf8] sm:$0xff] }
 0x11c   : > { %3978 = vmatprep.subr.bf16.mxu1 %v4307_v46  ;;  %v3416_v45 = vcombine.low %v867_v43, %v883_v44  ;;  %v3417_v46 = vcombine.high %v867_v43, %v883_v44 }
 0x11e   : > { %3957 = vmatpush3.bf16.msra.mxu0 %v4308_v47 }
 0x11f   : > { %3979 = vmatpush3.bf16.msra.mxu1 %v4309_v48  ;;  %3986 = vmatprep.subr.bf16.mxu0 %v4310_v57 }
 0x120   : > { %4008 = vmatprep.subr.bf16.mxu1 %v4311_v58 }
 0x121   : > { %3105 = vmatmul.mubr.bf16.vlgmr.msra.gmra.mrb[24].mxu0 %v3410_v52 }
 0x122   : > { %3146 = vmatmul.mubr.bf16.vlgmr.msra.gmra.mrb[24].mxu1 %v3412_v55  ;;  %3987 = vmatpush3.bf16.msra.mxu0 %v4312_v59 }
 0x123   : > { %4009 = vmatpush3.bf16.msra.mxu1 %v4313_v60  ;;  %3988 = vmatprep.subr.bf16.mxu0 %v4314_v61 }
 0x124   : > { %4010 = vmatprep.subr.bf16.mxu1 %v4315_v62  ;;  %3186 = vmatprep.mubr.bf16.mxu0 %v3415_v42 }
 0x125   : > { %3227 = vmatprep.mubr.bf16.mxu1 %v3417_v46 }
 0x126   : > { %3989 = vmatpush3.bf16.msra.mxu0 %v4316_v63 }
 0x127   : > { %4011 = vmatpush3.bf16.msra.mxu1 %v4317_v0  ;;  %3990 = vmatprep.subr.bf16.mxu0 %v4318_v1 }
 0x128   : > { %4012 = vmatprep.subr.bf16.mxu1 %v4319_v2 }
 0x12a   : > { %3991 = vmatpush3.bf16.msra.mxu0 %v4320_v3 }
 0x12b   : > { %4013 = vmatpush3.bf16.msra.mxu1 %v4321_v4  ;;  %3992 = vmatprep.subr.bf16.mxu0 %v4322_v5 }
 0x12c   : > { %4014 = vmatprep.subr.bf16.mxu1 %v4323_v6 }
 0x12e   : > { %3993 = vmatpush3.bf16.msra.mxu0 %v4324_v7 }
 0x12f   : > { %4015 = vmatpush3.bf16.msra.mxu1 %v4325_v8  ;;  %3994 = vmatprep.subr.bf16.mxu0 %v4326_v9 }
 0x130   : > { %4016 = vmatprep.subr.bf16.mxu1 %v4327_v11 }
 0x132   : > { %3995 = vmatpush3.bf16.msra.mxu0 %v4328_v13 }
 0x133   : > { %4017 = vmatpush3.bf16.msra.mxu1 %v4329_v15  ;;  %3996 = vmatprep.subr.bf16.mxu0 %v4330_v19 }
 0x134   : > { %v3694_v10 = vpop.f32.mrb[0].mxu0  ;;  %4018 = vmatprep.subr.bf16.mxu1 %v4331_v21 }
 0x135   : > { %v3716_v12 = vpop.f32.mrb[0].mxu1  ;;  %v3695_v14 = vpop.f32.mrb[1].mxu0 }
 0x136   : > { %v3696_v16 = vadd.f32 %v3695_v14, %v3694_v10  ;;  %v3717_v17 = vpop.f32.mrb[1].mxu1  ;;  %v3697_v20 = vpop.f32.mrb[2].mxu0  ;;  %3997 = vmatpush3.bf16.msra.mxu0 %v4332_v24 }
 0x137   : > { %v3718_v18 = vadd.f32 %v3717_v17, %v3716_v12  ;;  %v3719_v22 = vpop.f32.mrb[2].mxu1  ;;  %v3698_v25 = vpop.f32.mrb[3].mxu0  ;;  %4019 = vmatpush3.bf16.msra.mxu1 %v4333_v26  ;;  %3998 = vmatprep.subr.bf16.mxu0 %v4334_v30 }
 0x138   : > { %v3699_v27 = vadd.f32 %v3698_v25, %v3697_v20  ;;  %v3720_v28 = vpop.f32.mrb[3].mxu1  ;;  %4020 = vmatprep.subr.bf16.mxu1 %v4335_v31 }
 0x139   : > { %v2656_v23 = vadd.f32 %v3718_v18, %v3696_v16  ;;  %v3721_v29 = vadd.f32 %v3720_v28, %v3719_v22 }
 0x13a   : > { %3999 = vmatpush3.bf16.msra.mxu0 %v4336_v33 }
 0x13b   : > { %v2659_v32 = vadd.f32 %v3721_v29, %v3699_v27  ;;  %4021 = vmatpush3.bf16.msra.mxu1 %v4337_v34  ;;  %4000 = vmatprep.subr.bf16.mxu0 %v4338_v35 }
 0x13c   : > { %4022 = vmatprep.subr.bf16.mxu1 %v4339_v36 }
 0x13e   : > { %4001 = vmatpush3.bf16.msra.mxu0 %v4340_v37 }
 0x13f   : > { %4023 = vmatpush3.bf16.msra.mxu1 %v4341_v38 }
 0x141   : > { %3187 = vmatmul.mubr.bf16.vlgmr.msra.gmra.mrb[28].mxu0 %v3414_v41 }
 0x142   : > { %3228 = vmatmul.mubr.bf16.vlgmr.msra.gmra.mrb[28].mxu1 %v3416_v45 }
 0x154   : > { %v3738_v47 = vpop.f32.mrb[4].mxu0 }
 0x155   : > { %v3760_v48 = vpop.f32.mrb[4].mxu1  ;;  %v3739_v49 = vpop.f32.mrb[5].mxu0 }
 0x156   : > { %v3740_v50 = vadd.f32 %v3739_v49, %v3738_v47  ;;  %v3761_v51 = vpop.f32.mrb[5].mxu1  ;;  %v3741_v52 = vpop.f32.mrb[6].mxu0 }
 0x157   : > { %v3762_v53 = vadd.f32 %v3761_v51, %v3760_v48  ;;  %v3763_v54 = vpop.f32.mrb[6].mxu1  ;;  %v3742_v55 = vpop.f32.mrb[7].mxu0 }
 0x158   : > { %v2697_v56 = vadd.f32 %v3740_v50, %v2656_v23  ;;  %v3743_v57 = vadd.f32 %v3742_v55, %v3741_v52  ;;  %v3764_v58 = vpop.f32.mrb[7].mxu1 }
 0x159   : > { %v3765_v59 = vadd.f32 %v3764_v58, %v3763_v54 }
 0x15a   : > { %v2738_v60 = vadd.f32 %v3762_v53, %v2697_v56  ;;  %v2700_v61 = vadd.f32 %v3743_v57, %v2659_v32 }
 0x15c   : > { %v2741_v62 = vadd.f32 %v3765_v59, %v2700_v61 }
 0x174   : > { %v3782_v63 = vpop.f32.mrb[8].mxu0 }
 0x175   : > { %v3804_v0 = vpop.f32.mrb[8].mxu1  ;;  %v3783_v1 = vpop.f32.mrb[9].mxu0 }
 0x176   : > { %v3784_v2 = vadd.f32 %v3783_v1, %v3782_v63  ;;  %v3805_v3 = vpop.f32.mrb[9].mxu1  ;;  %v3785_v4 = vpop.f32.mrb[10].mxu0 }
 0x177   : > { %v3806_v5 = vadd.f32 %v3805_v3, %v3804_v0  ;;  %v3807_v6 = vpop.f32.mrb[10].mxu1  ;;  %v3786_v7 = vpop.f32.mrb[11].mxu0 }
 0x178   : > { %v2779_v8 = vadd.f32 %v3784_v2, %v2738_v60  ;;  %v3787_v9 = vadd.f32 %v3786_v7, %v3785_v4  ;;  %v3808_v10 = vpop.f32.mrb[11].mxu1 }
 0x179   : > { %v3809_v11 = vadd.f32 %v3808_v10, %v3807_v6 }
 0x17a   : > { %v2820_v12 = vadd.f32 %v3806_v5, %v2779_v8  ;;  %v2782_v13 = vadd.f32 %v3787_v9, %v2741_v62 }
 0x17c   : > { %v2823_v14 = vadd.f32 %v3809_v11, %v2782_v13 }
 0x194   : > { %v3826_v15 = vpop.f32.mrb[12].mxu0 }
 0x195   : > { %v3848_v16 = vpop.f32.mrb[12].mxu1  ;;  %v3827_v17 = vpop.f32.mrb[13].mxu0 }
 0x196   : > { %v3828_v18 = vadd.f32 %v3827_v17, %v3826_v15  ;;  %v3849_v19 = vpop.f32.mrb[13].mxu1  ;;  %v3829_v20 = vpop.f32.mrb[14].mxu0 }
 0x197   : > { %v3850_v21 = vadd.f32 %v3849_v19, %v3848_v16  ;;  %v3851_v22 = vpop.f32.mrb[14].mxu1  ;;  %v3830_v23 = vpop.f32.mrb[15].mxu0 }
 0x198   : > { %v2861_v24 = vadd.f32 %v3828_v18, %v2820_v12  ;;  %v3831_v25 = vadd.f32 %v3830_v23, %v3829_v20  ;;  %v3852_v26 = vpop.f32.mrb[15].mxu1 }
 0x199   : > { %v3853_v27 = vadd.f32 %v3852_v26, %v3851_v22 }
 0x19a   : > { %v2902_v28 = vadd.f32 %v3850_v21, %v2861_v24  ;;  %v2864_v29 = vadd.f32 %v3831_v25, %v2823_v14 }
 0x19c   : > { %v2905_v30 = vadd.f32 %v3853_v27, %v2864_v29  ;;  %v850_v27 = vld [vmem:[#allocation2] sm:$0xff] }
 0x1b4   : > { %v3870_v31 = vpop.f32.mrb[16].mxu0 }
 0x1b5   : > { %v3892_v32 = vpop.f32.mrb[16].mxu1  ;;  %v3871_v33 = vpop.f32.mrb[17].mxu0 }
 0x1b6   : > { %v3872_v34 = vadd.f32 %v3871_v33, %v3870_v31  ;;  %v3893_v35 = vpop.f32.mrb[17].mxu1  ;;  %v3873_v36 = vpop.f32.mrb[18].mxu0  ;;  %v851_v31 = vld [vmem:[#allocation2 + $0x8] sm:$0xff] }
 0x1b7   : > { %v3894_v37 = vadd.f32 %v3893_v35, %v3892_v32  ;;  %v3895_v38 = vpop.f32.mrb[18].mxu1  ;;  %v3874_v39 = vpop.f32.mrb[19].mxu0 }
 0x1b8   : > { %v2943_v40 = vadd.f32 %v3872_v34, %v2902_v28  ;;  %v3875_v41 = vadd.f32 %v3874_v39, %v3873_v36  ;;  %v3896_v42 = vpop.f32.mrb[19].mxu1 }
 0x1b9   : > { %v3897_v43 = vadd.f32 %v3896_v42, %v3895_v38 }
 0x1ba   : > { %v2984_v44 = vadd.f32 %v3894_v37, %v2943_v40  ;;  %v2946_v45 = vadd.f32 %v3875_v41, %v2905_v30 }
 0x1bc   : > { %v2987_v46 = vadd.f32 %v3897_v43, %v2946_v45 }
 0x1d4   : > { %v3914_v47 = vpop.f32.mrb[20].mxu0 }
 0x1d5   : > { %v3936_v48 = vpop.f32.mrb[20].mxu1  ;;  %v3915_v49 = vpop.f32.mrb[21].mxu0 }
 0x1d6   : > { %v3937_v50 = vpop.f32.mrb[21].mxu1  ;;  %v3916_v51 = vadd.f32 %v3915_v49, %v3914_v47  ;;  %v3917_v53 = vpop.f32.mrb[22].mxu0 }
 0x1d7   : > { %v3938_v52 = vadd.f32 %v3937_v50, %v3936_v48  ;;  %v3939_v54 = vpop.f32.mrb[22].mxu1  ;;  %v3918_v55 = vpop.f32.mrb[23].mxu0 }
 0x1d8   : > { %v3940_v56 = vpop.f32.mrb[23].mxu1  ;;  %v3025_v57 = vadd.f32 %v3916_v51, %v2984_v44  ;;  %v3919_v58 = vadd.f32 %v3918_v55, %v3917_v53 }
 0x1d9   : > { %v3941_v59 = vadd.f32 %v3940_v56, %v3939_v54 }
 0x1da   : > { %v3066_v60 = vadd.f32 %v3938_v52, %v3025_v57  ;;  %v3028_v61 = vadd.f32 %v3919_v58, %v2987_v46 }
 0x1dc   : > { %v3069_v62 = vadd.f32 %v3941_v59, %v3028_v61 }
 0x1f4   : > { %v3958_v63 = vpop.f32.mrb[24].mxu0 }
 0x1f5   : > { %v3980_v0 = vpop.f32.mrb[24].mxu1  ;;  %v3959_v1 = vpop.f32.mrb[25].mxu0 }
 0x1f6   : > { %v3960_v2 = vadd.f32 %v3959_v1, %v3958_v63  ;;  %v3981_v3 = vpop.f32.mrb[25].mxu1  ;;  %v3961_v4 = vpop.f32.mrb[26].mxu0 }
 0x1f7   : > { %v3982_v5 = vadd.f32 %v3981_v3, %v3980_v0  ;;  %v3983_v6 = vpop.f32.mrb[26].mxu1  ;;  %v3962_v7 = vpop.f32.mrb[27].mxu0 }
 0x1f8   : > { %v3107_v8 = vadd.f32 %v3960_v2, %v3066_v60  ;;  %v3963_v9 = vadd.f32 %v3962_v7, %v3961_v4  ;;  %v3984_v10 = vpop.f32.mrb[27].mxu1 }
 0x1f9   : > { %v3985_v11 = vadd.f32 %v3984_v10, %v3983_v6 }
 0x1fa   : > { %v3148_v12 = vadd.f32 %v3982_v5, %v3107_v8  ;;  %v3110_v13 = vadd.f32 %v3963_v9, %v3069_v62 }
 0x1fc   : > { %v3151_v14 = vadd.f32 %v3985_v11, %v3110_v13 }
 0x214   : > { %v4002_v15 = vpop.f32.mrb[28].mxu0 }
 0x215   : > { %v4024_v16 = vpop.f32.mrb[28].mxu1  ;;  %v4003_v17 = vpop.f32.mrb[29].mxu0 }
 0x216   : > { %v4004_v18 = vadd.f32 %v4003_v17, %v4002_v15  ;;  %v4025_v19 = vpop.f32.mrb[29].mxu1  ;;  %v4005_v20 = vpop.f32.mrb[30].mxu0 }
 0x217   : > { %v4026_v21 = vadd.f32 %v4025_v19, %v4024_v16  ;;  %v4027_v22 = vpop.f32.mrb[30].mxu1  ;;  %v4006_v23 = vpop.f32.mrb[31].mxu0 }
 0x218   : > { %v3189_v24 = vadd.f32 %v4004_v18, %v3148_v12  ;;  %v4007_v25 = vadd.f32 %v4006_v23, %v4005_v20  ;;  %v4028_v26 = vpop.f32.mrb[31].mxu1 }
 0x219   : > { %v4029_v28 = vadd.f32 %v4028_v26, %v4027_v22 }
 0x21a   : > { %v3230_v29 = vadd.f32 %v4026_v21, %v3189_v24  ;;  %v3192_v30 = vadd.f32 %v4007_v25, %v3151_v14  ;;  %3243 = sbr.rel (%p3674_p12) target bundleno = 553 (0x229), region = 63 }
 0x21c   : > { %v3236_v32 = vadd.f32 %v3230_v29, %v850_v27  ;;  %v3233_v33 = vadd.f32 %v4029_v28, %v3192_v30 }
 0x21e   : > { %3238 = vst [vmem:[#allocation2] sm:$0xff] %v3236_v32  ;;  %v3237_v34 = vadd.f32 %v3233_v33, %v851_v31 }
 0x220   : > { %3239 = vst [vmem:[#allocation2 + $0x8] sm:$0xff] %v3237_v34 }
 0x225   : > { %v3244_v35 = vld [vmem:[#allocation2] sm:$0xff] }
 0x226   : > { %3246 = vst [vmem:[%s4553_s24] sm:$0xff] %v3244_v35 }
 0x227   : > { %v3245_v36 = vld [vmem:[#allocation2 + $0x8] sm:$0xff] }
 0x228   : > { %3247 = vst [vmem:[%s4553_s24 + $0x8] sm:$0xff] %v3245_v36 }
 0x229 PF: > { %s13_s18 = sadd.s32 1, %s4396_s18   ;;  %s4931_s12 = smov %s4376_s13 }
 0x22a   : > { %p10_p13 = scmp.ge.s32.totalorder %s13_s18, 6   ;;  %s4932_s13 = smov %s4469_s25 }
 0x22b   : > { %s4933_s14 = smov %s4388_s16  ;;  %s4934_s15 = smov %s4392_s17 }
 0x22c   : > { %s4935_s16 = smov %s4938_s19  ;;  %s4936_s17 = smov %s4942_s20 }
 0x22d   :  { %12 = sbr.rel (!%p10_p13) target bundleno = 4 (0x4), region = 105 }

</bundles_post_ra>
